<compile_context>
chip_gen: v6e
topology: v6e:2x2x1
jax: 0.10.0
libtpu: 0.0.40
codegen_flags: <defaults>
</compile_context>

<pallas_src>
import jax
import jax.numpy as jnp
import numpy as np
from jax.experimental import pallas as pl
from jax.experimental.pallas import tpu as pltpu  # noqa: F401 (kept for clarity)

# ---- small synthetic "BERT" config (deterministic init, no checkpoint) -----
B        = 2      # batch
S_WP     = 16     # word-piece sequence length
S_W      = 8      # word sequence length (after 'first' word-piece pooling)
HIDDEN   = 32
N_HEADS  = 2
HEAD_DIM = HIDDEN // N_HEADS
FF       = 64     # intermediate size
N_LAYERS = 2
VOCAB    = 96     # word-piece vocab (post resize_token_embeddings)
MAX_POS  = 32
TARGET   = 6      # len(vocabs['target']) - pad - unk
LN_EPS   = 1e-12

ATTN_SCALE = 1.0 / (float(HEAD_DIM) ** 0.5)
BS       = B * S_WP                 # batches folded onto sublanes
HS       = N_HEADS * BS             # head-stacked score-slab rows
QKV_PAD  = 128                      # [Wq|Wk|Wv] (96 cols) padded to one lane tile
WO_PAD   = 128                      # Wo (32 cols) padded to one lane tile
W_IN_COLS = QKV_PAD + WO_PAD + FF   # 320: tile-aligned slab segments
N_VEC    = 8                        # packed bias / LN vectors per layer
VEC_COLS = 128
CLS_PAD  = 128                      # lane-dense classifier output width


# ============================ Pallas kernel =================================

def fused_bert_kernel(x_ref, amask_ref, bmask_ref, sel_ref,
                      w_in_ref, w_down_ref, vec_ref,
                      cls_w_ref, cls_b_ref, o_ref):
    """Whole eval forward in one invocation (no grid).

    x_ref     : [B*S_WP, H]  f32 embedding output, batches stacked on sublanes
    amask_ref : [HS, B*S_WP] f32 additive mask (key padding + cross-batch)
    bmask_ref : [HS, H]      f32 head block-mask
    sel_ref   : [B*S_W, B*S_WP] bf16 one-hot 'first'-pool gather matrix
    w_in_ref  : [L, H, 320]  bf16  [Wq*s|Wk|Wv|pad | Wo|pad | W1]
    w_down_ref: [L, FF, H]   bf16  W2
    vec_ref   : [L, 8, 128]  f32   packed biases / LN vectors
    """
    x = x_ref[...]                       # [BS, H] f32 residual stream
    amask = amask_ref[...]               # [HS, BS]
    bmask = bmask_ref[...]               # [HS, H]

    inv_h = 1.0 / HIDDEN

    def layer_norm(z, g, b):
        # Single-pass statistics: both reduces depend only on z, so they
        # stream back-to-back into the XLU (no mu -> var dependency).
        s1 = jnp.sum(z, axis=-1, keepdims=True)
        s2 = jnp.sum(z * z, axis=-1, keepdims=True)
        mu = s1 * inv_h
        var = jnp.maximum(s2 * inv_h - mu * mu, 0.0)
        return (z - mu) * jax.lax.rsqrt(var + LN_EPS) * g + b

    for l in range(N_LAYERS):            # static unroll: all weights preloaded
        w_in = w_in_ref[l]               # [H, 320] bf16
        w_down = w_down_ref[l]           # [FF, H]  bf16
        vecs = vec_ref[l]                # [N_VEC, 128] f32

        b_qkv = vecs[0:1, :]             # [1, 128] (ATTN_SCALE folded into q part)
        b_o   = vecs[1:2, :HIDDEN]
        g1    = vecs[2:3, :HIDDEN]
        be1   = vecs[3:4, :HIDDEN]
        b_1   = vecs[4:5, :FF]
        b_2   = vecs[5:6, :HIDDEN]
        g2    = vecs[6:7, :HIDDEN]
        be2   = vecs[7:8, :HIDDEN]

        # -------- self-attention: heads AND batches stacked on sublanes -----
        x_bf = x.astype(jnp.bfloat16)
        qkv = jnp.dot(x_bf, w_in[:, :QKV_PAD],
                      preferred_element_type=jnp.float32) + b_qkv   # [BS, 128]
        q = qkv[:, 0:HIDDEN]             # already scaled by 1/sqrt(head_dim)
        k = qkv[:, HIDDEN:2 * HIDDEN]
        v = qkv[:, 2 * HIDDEN:3 * HIDDEN]

        # Replicate q per head on sublanes, zero other heads' columns: one
        # [HS,H] x [BS,H]^T matmul yields all per-head scores stacked on
        # sublanes; the precomputed additive mask kills padded keys and
        # cross-batch pairs in a single add.
        q_rep = jnp.concatenate([q] * N_HEADS, axis=0)               # [HS, H]
        q_exp = (q_rep * bmask).astype(jnp.bfloat16)
        k_bf = k.astype(jnp.bfloat16)
        v_bf = v.astype(jnp.bfloat16)

        scores = jax.lax.dot_general(
            q_exp, k_bf, (((1,), (1,)), ((), ())),
            preferred_element_type=jnp.float32) + amask              # [HS, BS]
        m = jnp.max(scores, axis=-1, keepdims=True)
        p = jnp.exp(scores - m)
        p = p * pl.reciprocal(jnp.sum(p, axis=-1, keepdims=True), approx=True)

        ctx_full = jnp.dot(p.astype(jnp.bfloat16), v_bf,
                           preferred_element_type=jnp.float32)       # [HS, H]
        # Keep only head h's columns inside its sublane block, collapse heads
        # (sublane-only data movement; no lane repack).
        ctx = jnp.sum((ctx_full * bmask).reshape(N_HEADS, BS, HIDDEN), axis=0)

        attn_out = jnp.dot(
            ctx.astype(jnp.bfloat16), w_in[:, QKV_PAD:QKV_PAD + WO_PAD],
            preferred_element_type=jnp.float32)[:, :HIDDEN] + b_o
        h1 = layer_norm(x + attn_out, g1, be1)

        # ------------------------------ FFN ---------------------------------
        ff = jnp.dot(h1.astype(jnp.bfloat16), w_in[:, QKV_PAD + WO_PAD:],
                     preferred_element_type=jnp.float32) + b_1
        # TODO(synk): HF BERT uses exact erf GELU; tanh approximation used here.
        ff = jax.nn.gelu(ff, approximate=True)
        ff = jnp.dot(ff.astype(jnp.bfloat16), w_down,
                     preferred_element_type=jnp.float32) + b_2
        x = layer_norm(h1 + ff, g2, be2)

    # ----- 'first' word-piece gather (one-hot, bf16) + linear classifier ----
    gathered = jnp.dot(sel_ref[...], x.astype(jnp.bfloat16),
                       preferred_element_type=jnp.float32)           # [B*S_W, H]
    o_ref[...] = (jnp.dot(gathered.astype(jnp.bfloat16), cls_w_ref[...],
                          preferred_element_type=jnp.float32)
                  + cls_b_ref[...])                                   # [B*S_W, 128]


# ============================ Pallas wrapper ================================

def bert_encoder_classifier(x_flat, amask, bmask, sel,
                            w_in, w_down, vecs, cls_w_pad, cls_b_pad):
    # Grid-less call: every operand (<< 1 MiB total) lives whole in VMEM, so
    # there is nothing to pipeline and zero grid-step overhead.
    return pl.pallas_call(
        fused_bert_kernel,
        out_shape=jax.ShapeDtypeStruct((B * S_W, CLS_PAD), jnp.float32),
    )(x_flat, amask, bmask, sel, w_in, w_down, vecs, cls_w_pad, cls_b_pad)


# =============================== JAX glue ===================================

def _layer_norm_ref(x, g, b):
    mu = jnp.mean(x, axis=-1, keepdims=True)
    var = jnp.mean((x - mu) ** 2, axis=-1, keepdims=True)
    return (x - mu) / jnp.sqrt(var + LN_EPS) * g + b


def bert_embeddings(word_pieces, params):
    # word + position + token-type embeddings, then LayerNorm (dropout is a
    # no-op in eval mode).  Gathers stay in plain JAX (glue).
    we = params["word_emb"][word_pieces]                       # [B, S, H]
    pe = params["pos_emb"][: word_pieces.shape[1]]             # [S, H]
    te = params["type_emb"][0]                                 # [H]
    emb = we + pe[None, :, :] + te[None, None, :]
    return _layer_norm_ref(emb, params["emb_ln_g"], params["emb_ln_b"])


def pack_params(params):
    """Host-side coalescing into lane-tile-aligned slabs + padded classifier."""
    w_in_l, w_down_l, vec_l = [], [], []

    def pad_lane(v, width):
        return jnp.pad(v, ((0, 0), (0, width - v.shape[1])))

    for (wq, bq, wk, bk, wv, bv, wo, bo, g1, be1,
         w1, b1, w2, b2, g2, be2) in params["layers"]:
        # Fold the attention scale into the query projection (weights + bias).
        wq_s, bq_s = wq * ATTN_SCALE, bq * ATTN_SCALE
        qkv_w = pad_lane(jnp.concatenate([wq_s, wk, wv], axis=1), QKV_PAD)
        wo_p = pad_lane(wo, WO_PAD)
        w_in_l.append(jnp.concatenate([qkv_w, wo_p, w1], axis=1))    # [H, 320]
        w_down_l.append(w2)                                          # [FF, H]
        b_qkv = pad_lane(jnp.concatenate([bq_s, bk, bv], axis=1), VEC_COLS)
        vec_l.append(jnp.concatenate(
            [b_qkv] + [pad_lane(v, VEC_COLS)
                       for v in (bo, g1, be1, b1, b2, g2, be2)],
            axis=0))                                                 # [8, 128]
    return {
        "w_in":   jnp.stack(w_in_l).astype(jnp.bfloat16),
        "w_down": jnp.stack(w_down_l).astype(jnp.bfloat16),
        "vecs":   jnp.stack(vec_l).astype(jnp.float32),
        "cls_w_pad": jnp.pad(params["cls_w"],
                             ((0, 0), (0, CLS_PAD - TARGET))).astype(jnp.bfloat16),
        "cls_b_pad": jnp.pad(params["cls_b"],
                             ((0, 0), (0, CLS_PAD - TARGET))).astype(jnp.float32),
    }


def bert_seqlabel_ee_forward(word_pieces, bert_attention_mask,
                             first_word_pieces_pos, params, packed):
    """Eval-mode forward of BERT_SeqLabel_EE (after_bert='linear', no CRF)."""
    h0 = bert_embeddings(word_pieces, params).reshape(BS, HIDDEN)

    # Combined additive mask: -1e4 for padded keys and for cross-batch pairs,
    # replicated per head (score rows ordered (head, batch, query)).
    key_pad = ((1.0 - bert_attention_mask.astype(jnp.float32))
               * -10000.0).reshape(BS)                          # [BS]
    batch_of = jnp.repeat(jnp.arange(B, dtype=jnp.int32), S_WP)  # [BS]
    same_b = batch_of[:, None] == batch_of[None, :]
    amask = jnp.tile(jnp.where(same_b, key_pad[None, :], -10000.0),
                     (N_HEADS, 1))                               # [HS, BS]

    # Head block-mask: hidden column c belongs to the score row's head.
    head_of_row = jnp.repeat(jnp.arange(N_HEADS, dtype=jnp.int32), BS)
    head_of_col = jnp.arange(HIDDEN, dtype=jnp.int32) // HEAD_DIM
    bmask = (head_of_row[:, None] == head_of_col[None, :]).astype(jnp.float32)

    # 'first' word-piece one-hot gather matrix (batch offsets folded in).
    pos_flat = (first_word_pieces_pos.astype(jnp.int32)
                + jnp.arange(B, dtype=jnp.int32)[:, None] * S_WP).reshape(-1)
    sel = (jnp.arange(BS, dtype=jnp.int32)[None, :]
           == pos_flat[:, None]).astype(jnp.bfloat16)            # [B*S_W, BS]

    pred_pad = bert_encoder_classifier(
        h0, amask, bmask, sel,
        packed["w_in"], packed["w_down"], packed["vecs"],
        packed["cls_w_pad"], packed["cls_b_pad"])                # fused Pallas call
    return {"pred": pred_pad.reshape(B, S_W, CLS_PAD)[..., :TARGET]}
    # TODO(synk): CRF (loss / viterbi_decode) and training CrossEntropyLoss
    # branches are not implemented; this is the eval, non-CRF path.


# ========================= pure-JAX reference ===============================

def _ref_layer(x, add_mask, p):
    wq, bq, wk, bk, wv, bv, wo, bo, g1, be1, w1, b1, w2, b2, g2, be2 = p
    Bb, S, H = x.shape
    def heads(t):
        return t.reshape(Bb, S, N_HEADS, HEAD_DIM).transpose(0, 2, 1, 3)
    q, k, v = heads(x @ wq + bq), heads(x @ wk + bk), heads(x @ wv + bv)
    scores = jnp.einsum("bhqd,bhkd->bhqk", q, k) / (HEAD_DIM ** 0.5)
    scores = scores + add_mask[:, :, None, :]
    attn = jax.nn.softmax(scores, axis=-1)
    ctx = jnp.einsum("bhqk,bhkd->bhqd", attn, v)
    ctx = ctx.transpose(0, 2, 1, 3).reshape(Bb, S, H)
    h1 = _layer_norm_ref(x + ctx @ wo + bo, g1, be1)
    ff = jax.nn.gelu(h1 @ w1 + b1, approximate=True) @ w2 + b2
    return _layer_norm_ref(h1 + ff, g2, be2)


def ref_forward(word_pieces, bert_attention_mask, first_word_pieces_pos, params):
    h = bert_embeddings(word_pieces, params)
    add_mask = ((1.0 - bert_attention_mask.astype(jnp.float32)) * -10000.0)[:, None, :]
    for p in params["layers"]:
        h = _ref_layer(h, add_mask, p)
    encoded = jnp.take_along_axis(h, first_word_pieces_pos[..., None], axis=1)
    return encoded @ params["cls_w"] + params["cls_b"]


# =========================== parameter init =================================

def init_params(key):
    def nrm(k, shape):
        return 0.02 * jax.random.normal(k, shape, jnp.float32)
    keys = jax.random.split(key, 8 + N_LAYERS)
    params = {
        "word_emb": nrm(keys[0], (VOCAB, HIDDEN)),
        "pos_emb":  nrm(keys[1], (MAX_POS, HIDDEN)),
        "type_emb": nrm(keys[2], (2, HIDDEN)),
        "emb_ln_g": jnp.ones((HIDDEN,), jnp.float32),
        "emb_ln_b": jnp.zeros((HIDDEN,), jnp.float32),
        "cls_w":    nrm(keys[3], (HIDDEN, TARGET)),
        "cls_b":    nrm(keys[4], (1, TARGET)),
        "layers":   [],
    }
    for l in range(N_LAYERS):
        lk = jax.random.split(keys[8 + l], 10)
        layer = (
            nrm(lk[0], (HIDDEN, HIDDEN)), nrm(lk[1], (1, HIDDEN)),   # Wq, bq
            nrm(lk[2], (HIDDEN, HIDDEN)), nrm(lk[3], (1, HIDDEN)),   # Wk, bk
            nrm(lk[4], (HIDDEN, HIDDEN)), nrm(lk[5], (1, HIDDEN)),   # Wv, bv
            nrm(lk[6], (HIDDEN, HIDDEN)), nrm(lk[7], (1, HIDDEN)),   # Wo, bo
            jnp.ones((1, HIDDEN), jnp.float32), jnp.zeros((1, HIDDEN), jnp.float32),  # LN1
            nrm(lk[8], (HIDDEN, FF)),     jnp.zeros((1, FF), jnp.float32),            # W1, b1
            nrm(lk[9], (FF, HIDDEN)),     jnp.zeros((1, HIDDEN), jnp.float32),        # W2, b2
            jnp.ones((1, HIDDEN), jnp.float32), jnp.zeros((1, HIDDEN), jnp.float32),  # LN2
        )
        params["layers"].append(layer)
    return params


# ================================ main ======================================

if __name__ == "__main__":
    key = jax.random.PRNGKey(0)
    kp, kw = jax.random.split(key)
    params = init_params(kp)
    packed = pack_params(params)

    word_pieces = jax.random.randint(kw, (B, S_WP), 0, VOCAB, dtype=jnp.int32)
    # batch 0 fully valid; batch 1 has the last 4 word pieces padded out
    bert_attention_mask = jnp.concatenate(
        [jnp.ones((1, S_WP), jnp.float32),
         jnp.concatenate([jnp.ones((1, S_WP - 4), jnp.float32),
                          jnp.zeros((1, 4), jnp.float32)], axis=1)], axis=0)
    # 'first' word-piece position for each of the S_W words
    first_word_pieces_pos = jnp.tile(
        jnp.arange(0, 2 * S_W, 2, dtype=jnp.int32)[None, :], (B, 1))

    out = bert_seqlabel_ee_forward(word_pieces, bert_attention_mask,
                                   first_word_pieces_pos, params, packed)
    pred = jax.block_until_ready(out["pred"])

    pred_ref = jax.block_until_ready(
        ref_forward(word_pieces, bert_attention_mask, first_word_pieces_pos, params))

    # Tolerance accounts for bf16 MXU operands (f32 accumulation), the
    # approximate EUP reciprocal in softmax and the single-pass LN statistics
    # vs. the pure-f32 reference.
    np.testing.assert_allclose(np.asarray(pred), np.asarray(pred_ref),
                               rtol=2e-2, atol=2e-2)
    assert pred.shape == (B, S_W, TARGET)
    print("KERNEL_OK")
</pallas_src>

<mosaic_0001>
module attributes {stable_mosaic.version = 11 : i64} {
  func.func @fused_bert_kernel(%arg0: memref<32x32xf32, #tpu.memory_space<vmem>>, %arg1: memref<64x32xf32, #tpu.memory_space<vmem>>, %arg2: memref<64x32xf32, #tpu.memory_space<vmem>>, %arg3: memref<16x32xbf16, #tpu.memory_space<vmem>>, %arg4: memref<2x32x320xbf16, #tpu.memory_space<vmem>>, %arg5: memref<2x64x32xbf16, #tpu.memory_space<vmem>>, %arg6: memref<2x8x128xf32, #tpu.memory_space<vmem>>, %arg7: memref<32x128xbf16, #tpu.memory_space<vmem>>, %arg8: memref<1x128xf32, #tpu.memory_space<vmem>>, %arg9: memref<16x128xf32, #tpu.memory_space<vmem>>) attributes {dimension_semantics = [], scalar_prefetch = 0 : i64, scratch_operands = 0 : i64, tpu.core_type = #tpu.core_type<tc>} {
    %c0 = arith.constant 0 : index
    %c0_0 = arith.constant 0 : index
    %0 = vector.load %arg0[%c0, %c0_0] : memref<32x32xf32, #tpu.memory_space<vmem>>, vector<32x32xf32>
    %c0_1 = arith.constant 0 : index
    %c0_2 = arith.constant 0 : index
    %1 = vector.load %arg1[%c0_1, %c0_2] : memref<64x32xf32, #tpu.memory_space<vmem>>, vector<64x32xf32>
    %c0_3 = arith.constant 0 : index
    %c0_4 = arith.constant 0 : index
    %2 = vector.load %arg2[%c0_3, %c0_4] : memref<64x32xf32, #tpu.memory_space<vmem>>, vector<64x32xf32>
    %c0_5 = arith.constant 0 : index
    %c0_6 = arith.constant 0 : index
    %c0_7 = arith.constant 0 : index
    %3 = vector.load %arg4[%c0_5, %c0_6, %c0_7] : memref<2x32x320xbf16, #tpu.memory_space<vmem>>, vector<1x32x320xbf16>
    %4 = vector.shape_cast %3 : vector<1x32x320xbf16> to vector<32x320xbf16>
    %c0_8 = arith.constant 0 : index
    %c0_9 = arith.constant 0 : index
    %c0_10 = arith.constant 0 : index
    %5 = vector.load %arg5[%c0_8, %c0_9, %c0_10] : memref<2x64x32xbf16, #tpu.memory_space<vmem>>, vector<1x64x32xbf16>
    %6 = vector.shape_cast %5 : vector<1x64x32xbf16> to vector<64x32xbf16>
    %c0_11 = arith.constant 0 : index
    %c0_12 = arith.constant 0 : index
    %c0_13 = arith.constant 0 : index
    %7 = vector.load %arg6[%c0_11, %c0_12, %c0_13] : memref<2x8x128xf32, #tpu.memory_space<vmem>>, vector<1x8x128xf32>
    %8 = vector.shape_cast %7 : vector<1x8x128xf32> to vector<8x128xf32>
    %9 = vector.extract_strided_slice %8 {offsets = [0, 0], sizes = [1, 128], strides = [1, 1]} : vector<8x128xf32> to vector<1x128xf32>
    %10 = vector.extract_strided_slice %8 {offsets = [1, 0], sizes = [1, 32], strides = [1, 1]} : vector<8x128xf32> to vector<1x32xf32>
    %11 = vector.extract_strided_slice %8 {offsets = [2, 0], sizes = [1, 32], strides = [1, 1]} : vector<8x128xf32> to vector<1x32xf32>
    %12 = vector.extract_strided_slice %8 {offsets = [3, 0], sizes = [1, 32], strides = [1, 1]} : vector<8x128xf32> to vector<1x32xf32>
    %13 = vector.extract_strided_slice %8 {offsets = [4, 0], sizes = [1, 64], strides = [1, 1]} : vector<8x128xf32> to vector<1x64xf32>
    %14 = vector.extract_strided_slice %8 {offsets = [5, 0], sizes = [1, 32], strides = [1, 1]} : vector<8x128xf32> to vector<1x32xf32>
    %15 = vector.extract_strided_slice %8 {offsets = [6, 0], sizes = [1, 32], strides = [1, 1]} : vector<8x128xf32> to vector<1x32xf32>
    %16 = vector.extract_strided_slice %8 {offsets = [7, 0], sizes = [1, 32], strides = [1, 1]} : vector<8x128xf32> to vector<1x32xf32>
    %17 = arith.truncf %0 : vector<32x32xf32> to vector<32x32xbf16>
    %18 = vector.extract_strided_slice %4 {offsets = [0, 0], sizes = [32, 128], strides = [1, 1]} : vector<32x320xbf16> to vector<32x128xbf16>
    %cst = arith.constant dense<0.000000e+00> : vector<32x128xf32>
    %19 = tpu.matmul %17, %18, %cst {dimension_numbers = #tpu.dot_dimension_numbers<[1], [0], [0], [1], [0, 0, 1, 1], [], []>} : vector<32x32xbf16>, vector<32x128xbf16>, vector<32x128xf32> -> vector<32x128xf32>
    %20 = vector.broadcast %9 : vector<1x128xf32> to vector<32x128xf32>
    %21 = arith.addf %19, %20 : vector<32x128xf32>
    %22 = vector.extract_strided_slice %21 {offsets = [0, 0], sizes = [32, 32], strides = [1, 1]} : vector<32x128xf32> to vector<32x32xf32>
    %23 = vector.extract_strided_slice %21 {offsets = [0, 32], sizes = [32, 32], strides = [1, 1]} : vector<32x128xf32> to vector<32x32xf32>
    %24 = vector.extract_strided_slice %21 {offsets = [0, 64], sizes = [32, 32], strides = [1, 1]} : vector<32x128xf32> to vector<32x32xf32>
    %25 = tpu.concatenate %22, %22 in 0 : vector<32x32xf32>, vector<32x32xf32> -> vector<64x32xf32>
    %26 = arith.mulf %25, %2 : vector<64x32xf32>
    %27 = arith.truncf %26 : vector<64x32xf32> to vector<64x32xbf16>
    %28 = arith.truncf %23 : vector<32x32xf32> to vector<32x32xbf16>
    %29 = arith.truncf %24 : vector<32x32xf32> to vector<32x32xbf16>
    %cst_14 = arith.constant dense<0.000000e+00> : vector<64x32xf32>
    %30 = tpu.matmul %27, %28, %cst_14 {dimension_numbers = #tpu.dot_dimension_numbers<[1], [1], [0], [0], [0, 0, 1, 0], [], []>} : vector<64x32xbf16>, vector<32x32xbf16>, vector<64x32xf32> -> vector<64x32xf32>
    %31 = arith.addf %30, %1 : vector<64x32xf32>
    %cst_15 = arith.constant dense<0xFF800000> : vector<64xf32>
    %32 = vector.multi_reduction <maximumf>, %31, %cst_15 [1] : vector<64x32xf32> to vector<64xf32>
    %33 = vector.shape_cast %32 : vector<64xf32> to vector<64x1xf32>
    %34 = vector.broadcast %33 : vector<64x1xf32> to vector<64x32xf32>
    %35 = arith.subf %31, %34 : vector<64x32xf32>
    %36 = math.exp %35 : vector<64x32xf32>
    %cst_16 = arith.constant dense<0.000000e+00> : vector<64xf32>
    %37 = vector.multi_reduction <add>, %36, %cst_16 [1] : vector<64x32xf32> to vector<64xf32>
    %38 = vector.shape_cast %37 : vector<64xf32> to vector<64x1xf32>
    %39 = tpu.reciprocal %38 {approx = true} : vector<64x1xf32> -> vector<64x1xf32>
    %40 = vector.broadcast %39 : vector<64x1xf32> to vector<64x32xf32>
    %41 = arith.mulf %36, %40 : vector<64x32xf32>
    %42 = arith.truncf %41 : vector<64x32xf32> to vector<64x32xbf16>
    %cst_17 = arith.constant dense<0.000000e+00> : vector<64x32xf32>
    %43 = tpu.matmul %42, %29, %cst_17 {dimension_numbers = #tpu.dot_dimension_numbers<[1], [0], [0], [1], [0, 0, 1, 1], [], []>} : vector<64x32xbf16>, vector<32x32xbf16>, vector<64x32xf32> -> vector<64x32xf32>
    %44 = arith.mulf %43, %2 : vector<64x32xf32>
    %45 = vector.shape_cast %44 : vector<64x32xf32> to vector<2x32x32xf32>
    %cst_18 = arith.constant dense<0.000000e+00> : vector<32x32xf32>
    %46 = vector.multi_reduction <add>, %45, %cst_18 [0] : vector<2x32x32xf32> to vector<32x32xf32>
    %47 = arith.truncf %46 : vector<32x32xf32> to vector<32x32xbf16>
    %48 = vector.extract_strided_slice %4 {offsets = [0, 128], sizes = [32, 128], strides = [1, 1]} : vector<32x320xbf16> to vector<32x128xbf16>
    %cst_19 = arith.constant dense<0.000000e+00> : vector<32x128xf32>
    %49 = tpu.matmul %47, %48, %cst_19 {dimension_numbers = #tpu.dot_dimension_numbers<[1], [0], [0], [1], [0, 0, 1, 1], [], []>} : vector<32x32xbf16>, vector<32x128xbf16>, vector<32x128xf32> -> vector<32x128xf32>
    %50 = vector.extract_strided_slice %49 {offsets = [0, 0], sizes = [32, 32], strides = [1, 1]} : vector<32x128xf32> to vector<32x32xf32>
    %51 = vector.broadcast %10 : vector<1x32xf32> to vector<32x32xf32>
    %52 = arith.addf %50, %51 : vector<32x32xf32>
    %53 = arith.addf %0, %52 : vector<32x32xf32>
    %cst_20 = arith.constant dense<0.000000e+00> : vector<32xf32>
    %54 = vector.multi_reduction <add>, %53, %cst_20 [1] : vector<32x32xf32> to vector<32xf32>
    %55 = vector.shape_cast %54 : vector<32xf32> to vector<32x1xf32>
    %56 = arith.mulf %53, %53 : vector<32x32xf32>
    %cst_21 = arith.constant dense<0.000000e+00> : vector<32xf32>
    %57 = vector.multi_reduction <add>, %56, %cst_21 [1] : vector<32x32xf32> to vector<32xf32>
    %58 = vector.shape_cast %57 : vector<32xf32> to vector<32x1xf32>
    %cst_22 = arith.constant 3.125000e-02 : f32
    %59 = vector.broadcast %cst_22 : f32 to vector<32x1xf32>
    %60 = arith.mulf %55, %59 : vector<32x1xf32>
    %cst_23 = arith.constant 3.125000e-02 : f32
    %61 = vector.broadcast %cst_23 : f32 to vector<32x1xf32>
    %62 = arith.mulf %58, %61 : vector<32x1xf32>
    %63 = arith.mulf %60, %60 : vector<32x1xf32>
    %64 = arith.subf %62, %63 : vector<32x1xf32>
    %cst_24 = arith.constant 0.000000e+00 : f32
    %65 = vector.broadcast %cst_24 : f32 to vector<32x1xf32>
    %66 = arith.maximumf %64, %65 : vector<32x1xf32>
    %67 = vector.broadcast %60 : vector<32x1xf32> to vector<32x32xf32>
    %68 = arith.subf %53, %67 : vector<32x32xf32>
    %cst_25 = arith.constant 9.99999996E-13 : f32
    %69 = vector.broadcast %cst_25 : f32 to vector<32x1xf32>
    %70 = arith.addf %66, %69 : vector<32x1xf32>
    %71 = math.rsqrt %70 : vector<32x1xf32>
    %72 = vector.broadcast %71 : vector<32x1xf32> to vector<32x32xf32>
    %73 = arith.mulf %68, %72 : vector<32x32xf32>
    %74 = vector.broadcast %11 : vector<1x32xf32> to vector<32x32xf32>
    %75 = arith.mulf %73, %74 : vector<32x32xf32>
    %76 = vector.broadcast %12 : vector<1x32xf32> to vector<32x32xf32>
    %77 = arith.addf %75, %76 : vector<32x32xf32>
    %78 = arith.truncf %77 : vector<32x32xf32> to vector<32x32xbf16>
    %79 = vector.extract_strided_slice %4 {offsets = [0, 256], sizes = [32, 64], strides = [1, 1]} : vector<32x320xbf16> to vector<32x64xbf16>
    %cst_26 = arith.constant dense<0.000000e+00> : vector<32x64xf32>
    %80 = tpu.matmul %78, %79, %cst_26 {dimension_numbers = #tpu.dot_dimension_numbers<[1], [0], [0], [1], [0, 0, 1, 1], [], []>} : vector<32x32xbf16>, vector<32x64xbf16>, vector<32x64xf32> -> vector<32x64xf32>
    %81 = vector.broadcast %13 : vector<1x64xf32> to vector<32x64xf32>
    %82 = arith.addf %80, %81 : vector<32x64xf32>
    %83 = arith.mulf %82, %82 : vector<32x64xf32>
    %84 = arith.mulf %82, %83 : vector<32x64xf32>
    %cst_27 = arith.constant 4.471500e-02 : f32
    %85 = vector.broadcast %cst_27 : f32 to vector<32x64xf32>
    %86 = arith.mulf %85, %84 : vector<32x64xf32>
    %87 = arith.addf %82, %86 : vector<32x64xf32>
    %cst_28 = arith.constant 0.797884583 : f32
    %88 = vector.broadcast %cst_28 : f32 to vector<32x64xf32>
    %89 = arith.mulf %88, %87 : vector<32x64xf32>
    %90 = math.tanh %89 : vector<32x64xf32>
    %cst_29 = arith.constant 1.000000e+00 : f32
    %91 = vector.broadcast %cst_29 : f32 to vector<32x64xf32>
    %92 = arith.addf %91, %90 : vector<32x64xf32>
    %cst_30 = arith.constant 5.000000e-01 : f32
    %93 = vector.broadcast %cst_30 : f32 to vector<32x64xf32>
    %94 = arith.mulf %93, %92 : vector<32x64xf32>
    %95 = arith.mulf %82, %94 : vector<32x64xf32>
    %96 = arith.truncf %95 : vector<32x64xf32> to vector<32x64xbf16>
    %cst_31 = arith.constant dense<0.000000e+00> : vector<32x32xf32>
    %97 = tpu.matmul %96, %6, %cst_31 {dimension_numbers = #tpu.dot_dimension_numbers<[1], [0], [0], [1], [0, 0, 1, 1], [], []>} : vector<32x64xbf16>, vector<64x32xbf16>, vector<32x32xf32> -> vector<32x32xf32>
    %98 = vector.broadcast %14 : vector<1x32xf32> to vector<32x32xf32>
    %99 = arith.addf %97, %98 : vector<32x32xf32>
    %100 = arith.addf %77, %99 : vector<32x32xf32>
    %cst_32 = arith.constant dense<0.000000e+00> : vector<32xf32>
    %101 = vector.multi_reduction <add>, %100, %cst_32 [1] : vector<32x32xf32> to vector<32xf32>
    %102 = vector.shape_cast %101 : vector<32xf32> to vector<32x1xf32>
    %103 = arith.mulf %100, %100 : vector<32x32xf32>
    %cst_33 = arith.constant dense<0.000000e+00> : vector<32xf32>
    %104 = vector.multi_reduction <add>, %103, %cst_33 [1] : vector<32x32xf32> to vector<32xf32>
    %105 = vector.shape_cast %104 : vector<32xf32> to vector<32x1xf32>
    %cst_34 = arith.constant 3.125000e-02 : f32
    %106 = vector.broadcast %cst_34 : f32 to vector<32x1xf32>
    %107 = arith.mulf %102, %106 : vector<32x1xf32>
    %cst_35 = arith.constant 3.125000e-02 : f32
    %108 = vector.broadcast %cst_35 : f32 to vector<32x1xf32>
    %109 = arith.mulf %105, %108 : vector<32x1xf32>
    %110 = arith.mulf %107, %107 : vector<32x1xf32>
    %111 = arith.subf %109, %110 : vector<32x1xf32>
    %cst_36 = arith.constant 0.000000e+00 : f32
    %112 = vector.broadcast %cst_36 : f32 to vector<32x1xf32>
    %113 = arith.maximumf %111, %112 : vector<32x1xf32>
    %114 = vector.broadcast %107 : vector<32x1xf32> to vector<32x32xf32>
    %115 = arith.subf %100, %114 : vector<32x32xf32>
    %cst_37 = arith.constant 9.99999996E-13 : f32
    %116 = vector.broadcast %cst_37 : f32 to vector<32x1xf32>
    %117 = arith.addf %113, %116 : vector<32x1xf32>
    %118 = math.rsqrt %117 : vector<32x1xf32>
    %119 = vector.broadcast %118 : vector<32x1xf32> to vector<32x32xf32>
    %120 = arith.mulf %115, %119 : vector<32x32xf32>
    %121 = vector.broadcast %15 : vector<1x32xf32> to vector<32x32xf32>
    %122 = arith.mulf %120, %121 : vector<32x32xf32>
    %123 = vector.broadcast %16 : vector<1x32xf32> to vector<32x32xf32>
    %124 = arith.addf %122, %123 : vector<32x32xf32>
    %c1 = arith.constant 1 : index
    %c0_38 = arith.constant 0 : index
    %c0_39 = arith.constant 0 : index
    %125 = vector.load %arg4[%c1, %c0_38, %c0_39] : memref<2x32x320xbf16, #tpu.memory_space<vmem>>, vector<1x32x320xbf16>
    %126 = vector.shape_cast %125 : vector<1x32x320xbf16> to vector<32x320xbf16>
    %c1_40 = arith.constant 1 : index
    %c0_41 = arith.constant 0 : index
    %c0_42 = arith.constant 0 : index
    %127 = vector.load %arg5[%c1_40, %c0_41, %c0_42] : memref<2x64x32xbf16, #tpu.memory_space<vmem>>, vector<1x64x32xbf16>
    %128 = vector.shape_cast %127 : vector<1x64x32xbf16> to vector<64x32xbf16>
    %c1_43 = arith.constant 1 : index
    %c0_44 = arith.constant 0 : index
    %c0_45 = arith.constant 0 : index
    %129 = vector.load %arg6[%c1_43, %c0_44, %c0_45] : memref<2x8x128xf32, #tpu.memory_space<vmem>>, vector<1x8x128xf32>
    %130 = vector.shape_cast %129 : vector<1x8x128xf32> to vector<8x128xf32>
    %131 = vector.extract_strided_slice %130 {offsets = [0, 0], sizes = [1, 128], strides = [1, 1]} : vector<8x128xf32> to vector<1x128xf32>
    %132 = vector.extract_strided_slice %130 {offsets = [1, 0], sizes = [1, 32], strides = [1, 1]} : vector<8x128xf32> to vector<1x32xf32>
    %133 = vector.extract_strided_slice %130 {offsets = [2, 0], sizes = [1, 32], strides = [1, 1]} : vector<8x128xf32> to vector<1x32xf32>
    %134 = vector.extract_strided_slice %130 {offsets = [3, 0], sizes = [1, 32], strides = [1, 1]} : vector<8x128xf32> to vector<1x32xf32>
    %135 = vector.extract_strided_slice %130 {offsets = [4, 0], sizes = [1, 64], strides = [1, 1]} : vector<8x128xf32> to vector<1x64xf32>
    %136 = vector.extract_strided_slice %130 {offsets = [5, 0], sizes = [1, 32], strides = [1, 1]} : vector<8x128xf32> to vector<1x32xf32>
    %137 = vector.extract_strided_slice %130 {offsets = [6, 0], sizes = [1, 32], strides = [1, 1]} : vector<8x128xf32> to vector<1x32xf32>
    %138 = vector.extract_strided_slice %130 {offsets = [7, 0], sizes = [1, 32], strides = [1, 1]} : vector<8x128xf32> to vector<1x32xf32>
    %139 = arith.truncf %124 : vector<32x32xf32> to vector<32x32xbf16>
    %140 = vector.extract_strided_slice %126 {offsets = [0, 0], sizes = [32, 128], strides = [1, 1]} : vector<32x320xbf16> to vector<32x128xbf16>
    %cst_46 = arith.constant dense<0.000000e+00> : vector<32x128xf32>
    %141 = tpu.matmul %139, %140, %cst_46 {dimension_numbers = #tpu.dot_dimension_numbers<[1], [0], [0], [1], [0, 0, 1, 1], [], []>} : vector<32x32xbf16>, vector<32x128xbf16>, vector<32x128xf32> -> vector<32x128xf32>
    %142 = vector.broadcast %131 : vector<1x128xf32> to vector<32x128xf32>
    %143 = arith.addf %141, %142 : vector<32x128xf32>
    %144 = vector.extract_strided_slice %143 {offsets = [0, 0], sizes = [32, 32], strides = [1, 1]} : vector<32x128xf32> to vector<32x32xf32>
    %145 = vector.extract_strided_slice %143 {offsets = [0, 32], sizes = [32, 32], strides = [1, 1]} : vector<32x128xf32> to vector<32x32xf32>
    %146 = vector.extract_strided_slice %143 {offsets = [0, 64], sizes = [32, 32], strides = [1, 1]} : vector<32x128xf32> to vector<32x32xf32>
    %147 = tpu.concatenate %144, %144 in 0 : vector<32x32xf32>, vector<32x32xf32> -> vector<64x32xf32>
    %148 = arith.mulf %147, %2 : vector<64x32xf32>
    %149 = arith.truncf %148 : vector<64x32xf32> to vector<64x32xbf16>
    %150 = arith.truncf %145 : vector<32x32xf32> to vector<32x32xbf16>
    %151 = arith.truncf %146 : vector<32x32xf32> to vector<32x32xbf16>
    %cst_47 = arith.constant dense<0.000000e+00> : vector<64x32xf32>
    %152 = tpu.matmul %149, %150, %cst_47 {dimension_numbers = #tpu.dot_dimension_numbers<[1], [1], [0], [0], [0, 0, 1, 0], [], []>} : vector<64x32xbf16>, vector<32x32xbf16>, vector<64x32xf32> -> vector<64x32xf32>
    %153 = arith.addf %152, %1 : vector<64x32xf32>
    %cst_48 = arith.constant dense<0xFF800000> : vector<64xf32>
    %154 = vector.multi_reduction <maximumf>, %153, %cst_48 [1] : vector<64x32xf32> to vector<64xf32>
    %155 = vector.shape_cast %154 : vector<64xf32> to vector<64x1xf32>
    %156 = vector.broadcast %155 : vector<64x1xf32> to vector<64x32xf32>
    %157 = arith.subf %153, %156 : vector<64x32xf32>
    %158 = math.exp %157 : vector<64x32xf32>
    %cst_49 = arith.constant dense<0.000000e+00> : vector<64xf32>
    %159 = vector.multi_reduction <add>, %158, %cst_49 [1] : vector<64x32xf32> to vector<64xf32>
    %160 = vector.shape_cast %159 : vector<64xf32> to vector<64x1xf32>
    %161 = tpu.reciprocal %160 {approx = true} : vector<64x1xf32> -> vector<64x1xf32>
    %162 = vector.broadcast %161 : vector<64x1xf32> to vector<64x32xf32>
    %163 = arith.mulf %158, %162 : vector<64x32xf32>
    %164 = arith.truncf %163 : vector<64x32xf32> to vector<64x32xbf16>
    %cst_50 = arith.constant dense<0.000000e+00> : vector<64x32xf32>
    %165 = tpu.matmul %164, %151, %cst_50 {dimension_numbers = #tpu.dot_dimension_numbers<[1], [0], [0], [1], [0, 0, 1, 1], [], []>} : vector<64x32xbf16>, vector<32x32xbf16>, vector<64x32xf32> -> vector<64x32xf32>
    %166 = arith.mulf %165, %2 : vector<64x32xf32>
    %167 = vector.shape_cast %166 : vector<64x32xf32> to vector<2x32x32xf32>
    %cst_51 = arith.constant dense<0.000000e+00> : vector<32x32xf32>
    %168 = vector.multi_reduction <add>, %167, %cst_51 [0] : vector<2x32x32xf32> to vector<32x32xf32>
    %169 = arith.truncf %168 : vector<32x32xf32> to vector<32x32xbf16>
    %170 = vector.extract_strided_slice %126 {offsets = [0, 128], sizes = [32, 128], strides = [1, 1]} : vector<32x320xbf16> to vector<32x128xbf16>
    %cst_52 = arith.constant dense<0.000000e+00> : vector<32x128xf32>
    %171 = tpu.matmul %169, %170, %cst_52 {dimension_numbers = #tpu.dot_dimension_numbers<[1], [0], [0], [1], [0, 0, 1, 1], [], []>} : vector<32x32xbf16>, vector<32x128xbf16>, vector<32x128xf32> -> vector<32x128xf32>
    %172 = vector.extract_strided_slice %171 {offsets = [0, 0], sizes = [32, 32], strides = [1, 1]} : vector<32x128xf32> to vector<32x32xf32>
    %173 = vector.broadcast %132 : vector<1x32xf32> to vector<32x32xf32>
    %174 = arith.addf %172, %173 : vector<32x32xf32>
    %175 = arith.addf %124, %174 : vector<32x32xf32>
    %cst_53 = arith.constant dense<0.000000e+00> : vector<32xf32>
    %176 = vector.multi_reduction <add>, %175, %cst_53 [1] : vector<32x32xf32> to vector<32xf32>
    %177 = vector.shape_cast %176 : vector<32xf32> to vector<32x1xf32>
    %178 = arith.mulf %175, %175 : vector<32x32xf32>
    %cst_54 = arith.constant dense<0.000000e+00> : vector<32xf32>
    %179 = vector.multi_reduction <add>, %178, %cst_54 [1] : vector<32x32xf32> to vector<32xf32>
    %180 = vector.shape_cast %179 : vector<32xf32> to vector<32x1xf32>
    %cst_55 = arith.constant 3.125000e-02 : f32
    %181 = vector.broadcast %cst_55 : f32 to vector<32x1xf32>
    %182 = arith.mulf %177, %181 : vector<32x1xf32>
    %cst_56 = arith.constant 3.125000e-02 : f32
    %183 = vector.broadcast %cst_56 : f32 to vector<32x1xf32>
    %184 = arith.mulf %180, %183 : vector<32x1xf32>
    %185 = arith.mulf %182, %182 : vector<32x1xf32>
    %186 = arith.subf %184, %185 : vector<32x1xf32>
    %cst_57 = arith.constant 0.000000e+00 : f32
    %187 = vector.broadcast %cst_57 : f32 to vector<32x1xf32>
    %188 = arith.maximumf %186, %187 : vector<32x1xf32>
    %189 = vector.broadcast %182 : vector<32x1xf32> to vector<32x32xf32>
    %190 = arith.subf %175, %189 : vector<32x32xf32>
    %cst_58 = arith.constant 9.99999996E-13 : f32
    %191 = vector.broadcast %cst_58 : f32 to vector<32x1xf32>
    %192 = arith.addf %188, %191 : vector<32x1xf32>
    %193 = math.rsqrt %192 : vector<32x1xf32>
    %194 = vector.broadcast %193 : vector<32x1xf32> to vector<32x32xf32>
    %195 = arith.mulf %190, %194 : vector<32x32xf32>
    %196 = vector.broadcast %133 : vector<1x32xf32> to vector<32x32xf32>
    %197 = arith.mulf %195, %196 : vector<32x32xf32>
    %198 = vector.broadcast %134 : vector<1x32xf32> to vector<32x32xf32>
    %199 = arith.addf %197, %198 : vector<32x32xf32>
    %200 = arith.truncf %199 : vector<32x32xf32> to vector<32x32xbf16>
    %201 = vector.extract_strided_slice %126 {offsets = [0, 256], sizes = [32, 64], strides = [1, 1]} : vector<32x320xbf16> to vector<32x64xbf16>
    %cst_59 = arith.constant dense<0.000000e+00> : vector<32x64xf32>
    %202 = tpu.matmul %200, %201, %cst_59 {dimension_numbers = #tpu.dot_dimension_numbers<[1], [0], [0], [1], [0, 0, 1, 1], [], []>} : vector<32x32xbf16>, vector<32x64xbf16>, vector<32x64xf32> -> vector<32x64xf32>
    %203 = vector.broadcast %135 : vector<1x64xf32> to vector<32x64xf32>
    %204 = arith.addf %202, %203 : vector<32x64xf32>
    %205 = arith.mulf %204, %204 : vector<32x64xf32>
    %206 = arith.mulf %204, %205 : vector<32x64xf32>
    %cst_60 = arith.constant 4.471500e-02 : f32
    %207 = vector.broadcast %cst_60 : f32 to vector<32x64xf32>
    %208 = arith.mulf %207, %206 : vector<32x64xf32>
    %209 = arith.addf %204, %208 : vector<32x64xf32>
    %cst_61 = arith.constant 0.797884583 : f32
    %210 = vector.broadcast %cst_61 : f32 to vector<32x64xf32>
    %211 = arith.mulf %210, %209 : vector<32x64xf32>
    %212 = math.tanh %211 : vector<32x64xf32>
    %cst_62 = arith.constant 1.000000e+00 : f32
    %213 = vector.broadcast %cst_62 : f32 to vector<32x64xf32>
    %214 = arith.addf %213, %212 : vector<32x64xf32>
    %cst_63 = arith.constant 5.000000e-01 : f32
    %215 = vector.broadcast %cst_63 : f32 to vector<32x64xf32>
    %216 = arith.mulf %215, %214 : vector<32x64xf32>
    %217 = arith.mulf %204, %216 : vector<32x64xf32>
    %218 = arith.truncf %217 : vector<32x64xf32> to vector<32x64xbf16>
    %cst_64 = arith.constant dense<0.000000e+00> : vector<32x32xf32>
    %219 = tpu.matmul %218, %128, %cst_64 {dimension_numbers = #tpu.dot_dimension_numbers<[1], [0], [0], [1], [0, 0, 1, 1], [], []>} : vector<32x64xbf16>, vector<64x32xbf16>, vector<32x32xf32> -> vector<32x32xf32>
    %220 = vector.broadcast %136 : vector<1x32xf32> to vector<32x32xf32>
    %221 = arith.addf %219, %220 : vector<32x32xf32>
    %222 = arith.addf %199, %221 : vector<32x32xf32>
    %cst_65 = arith.constant dense<0.000000e+00> : vector<32xf32>
    %223 = vector.multi_reduction <add>, %222, %cst_65 [1] : vector<32x32xf32> to vector<32xf32>
    %224 = vector.shape_cast %223 : vector<32xf32> to vector<32x1xf32>
    %225 = arith.mulf %222, %222 : vector<32x32xf32>
    %cst_66 = arith.constant dense<0.000000e+00> : vector<32xf32>
    %226 = vector.multi_reduction <add>, %225, %cst_66 [1] : vector<32x32xf32> to vector<32xf32>
    %227 = vector.shape_cast %226 : vector<32xf32> to vector<32x1xf32>
    %cst_67 = arith.constant 3.125000e-02 : f32
    %228 = vector.broadcast %cst_67 : f32 to vector<32x1xf32>
    %229 = arith.mulf %224, %228 : vector<32x1xf32>
    %cst_68 = arith.constant 3.125000e-02 : f32
    %230 = vector.broadcast %cst_68 : f32 to vector<32x1xf32>
    %231 = arith.mulf %227, %230 : vector<32x1xf32>
    %232 = arith.mulf %229, %229 : vector<32x1xf32>
    %233 = arith.subf %231, %232 : vector<32x1xf32>
    %cst_69 = arith.constant 0.000000e+00 : f32
    %234 = vector.broadcast %cst_69 : f32 to vector<32x1xf32>
    %235 = arith.maximumf %233, %234 : vector<32x1xf32>
    %236 = vector.broadcast %229 : vector<32x1xf32> to vector<32x32xf32>
    %237 = arith.subf %222, %236 : vector<32x32xf32>
    %cst_70 = arith.constant 9.99999996E-13 : f32
    %238 = vector.broadcast %cst_70 : f32 to vector<32x1xf32>
    %239 = arith.addf %235, %238 : vector<32x1xf32>
    %240 = math.rsqrt %239 : vector<32x1xf32>
    %241 = vector.broadcast %240 : vector<32x1xf32> to vector<32x32xf32>
    %242 = arith.mulf %237, %241 : vector<32x32xf32>
    %243 = vector.broadcast %137 : vector<1x32xf32> to vector<32x32xf32>
    %244 = arith.mulf %242, %243 : vector<32x32xf32>
    %245 = vector.broadcast %138 : vector<1x32xf32> to vector<32x32xf32>
    %246 = arith.addf %244, %245 : vector<32x32xf32>
    %c0_71 = arith.constant 0 : index
    %c0_72 = arith.constant 0 : index
    %247 = vector.load %arg3[%c0_71, %c0_72] : memref<16x32xbf16, #tpu.memory_space<vmem>>, vector<16x32xbf16>
    %248 = arith.truncf %246 : vector<32x32xf32> to vector<32x32xbf16>
    %cst_73 = arith.constant dense<0.000000e+00> : vector<16x32xf32>
    %249 = tpu.matmul %247, %248, %cst_73 {dimension_numbers = #tpu.dot_dimension_numbers<[1], [0], [0], [1], [0, 0, 1, 1], [], []>} : vector<16x32xbf16>, vector<32x32xbf16>, vector<16x32xf32> -> vector<16x32xf32>
    %250 = arith.truncf %249 : vector<16x32xf32> to vector<16x32xbf16>
    %c0_74 = arith.constant 0 : index
    %c0_75 = arith.constant 0 : index
    %251 = vector.load %arg7[%c0_74, %c0_75] : memref<32x128xbf16, #tpu.memory_space<vmem>>, vector<32x128xbf16>
    %cst_76 = arith.constant dense<0.000000e+00> : vector<16x128xf32>
    %252 = tpu.matmul %250, %251, %cst_76 {dimension_numbers = #tpu.dot_dimension_numbers<[1], [0], [0], [1], [0, 0, 1, 1], [], []>} : vector<16x32xbf16>, vector<32x128xbf16>, vector<16x128xf32> -> vector<16x128xf32>
    %c0_77 = arith.constant 0 : index
    %c0_78 = arith.constant 0 : index
    %253 = vector.load %arg8[%c0_77, %c0_78] : memref<1x128xf32, #tpu.memory_space<vmem>>, vector<1x128xf32>
    %254 = vector.broadcast %253 : vector<1x128xf32> to vector<16x128xf32>
    %255 = arith.addf %252, %254 : vector<16x128xf32>
    %c0_79 = arith.constant 0 : index
    %c0_80 = arith.constant 0 : index
    %256 = vector.load %arg9[%c0_79, %c0_80] : memref<16x128xf32, #tpu.memory_space<vmem>>, vector<16x128xf32>
    tpu.vector_store %arg9[%c0_79, %c0_80], %255 {strides = array<i32>} : memref<16x128xf32, #tpu.memory_space<vmem>>, vector<16x128xf32>,
    return
  }
}

</mosaic_0001>

<bundles_post_ra>
// kernel: tpu_custom_call.1
= control target key start
LH: loop header
LB: loop body
LE: loop exit
PB: predicated region body
PF: predicated region fallthrough
CT: control target
= control target key end

     0   :  { %vm89_vm0 = vcmask 261120   ;;  %s2975_s0 = inlined_call_operand.vmem [shape: f32[32,32], index: 0, kind: input, shape index: {}]   ;;  %s2976_s1 = inlined_call_operand.vmem [shape: f32[64,32], index: 1, kind: input, shape index: {}]   ;;  %s2977_s2 = inlined_call_operand.vmem [shape: f32[64,32], index: 2, kind: input, shape index: {}]   ;;  %s2978_s3 = inlined_call_operand.vmem [shape: bf16[16,32], index: 3, kind: input, shape index: {}]   ;;  %s2979_s4 = inlined_call_operand.vmem [shape: bf16[2,32,320], index: 4, kind: input, shape index: {}]   ;;  %s2980_s5 = inlined_call_operand.vmem [shape: bf16[2,64,32], index: 5, kind: input, shape index: {}]   ;;  %s2981_s6 = inlined_call_operand.vmem [shape: f32[2,8,128], index: 6, kind: input, shape index: {}]   ;;  %s2982_s7 = inlined_call_operand.vmem [shape: bf16[32,128], index: 7, kind: input, shape index: {}]   ;;  %s2983_s8 = inlined_call_operand.vmem [shape: f32[1,128], index: 8, kind: input, shape index: {}]   ;;  %s2984_s9 = inlined_call_operand.hbm [shape: f32[16,128], index: 9, kind: output, shape index: {}]  }
   0x1   :  { %v2132_v0 = vld [vmem:[%s2979_s4 + $0x18] ss:$12 sps:$4 sm:$0xff]   ;;  %v2135_v1 = vld [vmem:[%s2979_s4] ss:$12 sps:$4 sm:$0xff]   ;;  %v2379_v5 = vld [vmem:[%s2975_s0 + $0x10] sm:$0xff] }
   0x2   :  { %1985 = vmatprep.subr.bf16.mxu0 %v2132_v0  ;;  %v2367_v2 = vld [vmem:[%s2975_s0] sm:$0xff]  ;;  %v2372_v3 = vld [vmem:[%s2975_s0 + $0x8] sm:$0xff]  ;;  %v2384_v6 = vld [vmem:[%s2975_s0 + $0x18] sm:$0xff] }
   0x3   :  { %1986 = vmatpush3.bf16.msra.mxu0 %v2132_v0  ;;  %v71_v4 = vpack.c.bf16 %v2372_v3, %v2367_v2  ;;  %v72_v7 = vpack.c.bf16 %v2384_v6, %v2379_v5 }
   0x4   :  { %1987 = vmatprep.subr.bf16.mxu0 %v2135_v1 }
   0x5   :  { %1989 = vmatprep.mubr.msk.bf16.mxu0 %vm89_vm0, %v71_v4 }
   0x7   :  { %1988 = vmatpush3.bf16.msra.mxu0 %v2135_v1 }
   0xa   :  { %1990 = vmatmul.mubr.msk.bf16.vlgmr.msra.gmra.mxu0 %vm89_vm0, %v72_v7 }
   0xb   :  { %14 = vsyncpa [#allocation3], 0  ;;  %v73_v8 = vlaneseq  ;;  %v2396_v11 = vld [vmem:[%s2981_s6] sm:$0xff]  ;;  %v2404_v16 = vld [vmem:[%s2977_s2 + $0x10] sm:$0xff]  ;;  %s2301_s17 = smov 96   ;;  %vm739_vm1 = vcmask 523264  }
   0xc   :  { %v2409_v17 = vld [vmem:[%s2977_s2 + $0x30] sm:$0xff]  ;;  %v2414_v18 = vld [vmem:[%s2977_s2 + $0x18] sm:$0xff]  ;;  %v2426_v25 = vld [vmem:[%s2977_s2 + $0x20] sm:$0xff]  ;;  %vm2304_vm2 = vmmov 0   ;;  %s2305_s0 = smov [#allocation2]  }
   0xd   :  { %v2390_v9 = vshrl.u32 %v73_v8, 7  ;;  %v2419_v19 = vld [vmem:[%s2977_s2 + $0x38] sm:$0xff]  ;;  %v2431_v26 = vld [vmem:[%s2977_s2 + $0x28] sm:$0xff]  ;;  %v2440_v32 = vld [vmem:[%s2977_s2] sm:$0xff]  ;;  %s1833_s23 = sshll.u32 %s2305_s0, 4  ;;  %s1834_s23 = int_to_ptr.vmem [resolvable:$true] %s1833_s23 }
   0xe   :  { %v2445_v33 = vld [vmem:[%s2977_s2 + $0x8] sm:$0xff]  ;;  %v2468_v47 = vld [vmem:[%s2976_s1 + $0x10] sm:$0xff]  ;;  %v2473_v49 = vld [vmem:[%s2976_s1] sm:$0xff]  ;;  %p2284_p1 = scmp.lt.s32.totalorder %s1834_s23, %s1834_s23 }
   0xf   :  { %v75_v10 = vsub.s32 0, %v2390_v9  ;;  %v2479_v52 = vld [vmem:[%s2976_s1 + $0x18] sm:$0xff]  ;;  %v2488_v59 = vld [vmem:[%s2976_s1 + $0x8] sm:$0xff]  ;;  %v2495_v63 = vld [vmem:[%s2976_s1 + $0x30] sm:$0xff] }
  0x10   :  { %v2502_v7 = vld [vmem:[%s2976_s1 + $0x20] sm:$0xff] }
  0x11   :  { %v76_v12 = vrot.slane %v2396_v11, %v75_v10 }
  0xca   :  { %v1991_v13 = vpop.f32.mrf.mxu0 }
  0xcb   :  { %v139_v14 = vadd.f32 %v1991_v13, %v76_v12 }
  0xcc   :  { %v130_v15 = vpop.f32.mrf.mxu0 }
  0xcd   :  { %v131_v21 = vadd.f32 %v130_v15, %v76_v12  ;;  %v147_v23 = vmul.f32 %v139_v14, %v2404_v16  ;;  %v151_v24 = vmul.f32 %v139_v14, %v2409_v17  ;;  %v2509_v15 = vld [vmem:[%s2976_s1 + $0x28] sm:$0xff] }
  0xce   :  { %v1992_v20 = vpop.f32.mrf.mxu0 }
  0xcf   :  { %v142_v22 = vadd.f32 %v1992_v20, %v76_v12  ;;  %v149_v34 = vmul.f32 %v131_v21, %v2426_v25  ;;  %v145_v38 = vmul.f32 %v131_v21, %v2440_v32 }
  0xd0   :  { %v133_v27 = vpop.f32.mrf.mxu0 }
  0xd1   :  { %v148_v28 = vmul.f32 %v142_v22, %v2414_v18  ;;  %v152_v29 = vmul.f32 %v142_v22, %v2419_v19  ;;  %v134_v30 = vadd.f32 %v133_v27, %v76_v12  ;;  %v2435_v31 = vpack.c.bf16 %v142_v22, %v139_v14  ;;  %v2516_v22 = vld [vmem:[%s2976_s1 + $0x38] sm:$0xff]  ;;  %s2302_s1 = smov 64  }
  0xd3   :  { %v154_v35 = vpack.c.bf16 %v148_v28, %v147_v23  ;;  %v156_v36 = vpack.c.bf16 %v152_v29, %v151_v24  ;;  %v150_v37 = vmul.f32 %v134_v30, %v2431_v26  ;;  %163 = vrot.lane.b32.xlu0 %v2435_v31, %s2301_s17  ;;  %v146_v39 = vmul.f32 %v134_v30, %v2445_v33 }
  0xd4   :  { %v2453_v41 = vpack.c.bf16 %v134_v30, %v131_v21 }
  0xd5   :  { %v155_v40 = vpack.c.bf16 %v150_v37, %v149_v34  ;;  %v153_v42 = vpack.c.bf16 %v146_v39, %v145_v38 }
  0xd7   :  { %161 = vrot.lane.b32.xlu0 %v2453_v41, %s2301_s17  ;;  %1997 = vmatprep.mubr.msk.bf16.mxu1 %vm89_vm0, %v153_v42 }
 0x145   :  { %v164_v43 = vpop.permute.xlu0 %163 }
 0x146   :  { %2121 = vmatprep.subr.msk.bf16.mxu1 %vm89_vm0, %v164_v43  ;;  %v181_v44 = vsel %vm89_vm0, %v164_v43, 0 }
 0x147   :  { %1994 = vmatpush3.bf16.xpose.msra.mxu1 %v181_v44 }
 0x149   :  { %v162_v45 = vpop.permute.xlu0 %161 }
 0x14a   :  { %2122 = vmatprep.subr.msk.bf16.mxu1 %vm89_vm0, %v162_v45  ;;  %v178_v46 = vsel %vm89_vm0, %v162_v45, 0 }
 0x14f   :  { %1996 = vmatpush3.bf16.xpose.msra.mxu1 %v178_v46 }
 0x156   :  { %1998 = vmatmul.mubr.msk.bf16.vlgmr.msra.gmra.mxu1 %vm89_vm0, %v154_v35 }
 0x157   :  { %2001 = vmatprep.mubr.msk.bf16.mxu1 %vm89_vm0, %v155_v40 }
 0x15e   :  { %2002 = vmatmul.mubr.msk.bf16.gmra.mxu1 %vm89_vm0, %v156_v36 }
 0x216   :  { %v1999_v48 = vpop.f32.mrf.mxu1 }
 0x217   :  { %v226_v50 = vadd.f32 %v1999_v48, %v2468_v47 }
 0x218   :  { %v217_v51 = vpop.f32.mrf.mxu1 }
 0x219   :  { %v218_v53 = vadd.f32 %v217_v51, %v2473_v49  ;;  %v254_v54 = vsel %vm89_vm0, %v226_v50, -inf }
 0x21a   :  { %255 = vmax.xlane.f32.xlu0 %v254_v54  ;;  %v2000_v55 = vpop.f32.mrf.mxu1 }
 0x21b   :  { %v229_v56 = vadd.f32 %v2000_v55, %v2479_v52  ;;  %v248_v57 = vsel %vm89_vm0, %v218_v53, -inf }
 0x21c   :  { %v220_v58 = vpop.f32.mrf.mxu1  ;;  %249 = vmax.xlane.f32.xlu1 %v248_v57 }
 0x21d   :  { %v221_v61 = vadd.f32 %v220_v58, %v2488_v59  ;;  %v257_v62 = vsel %vm89_vm0, %v229_v56, -inf }
 0x21e   :  { %v2003_v60 = vpop.f32.mrf.mxu1 }
 0x21f   :  { %v242_v1 = vadd.f32 %v2003_v60, %v2495_v63  ;;  %v251_v4 = vsel %vm89_vm0, %v221_v61, -inf }
 0x220   :  { %v233_v0 = vpop.f32.mrf.mxu1  ;;  %258 = vmax.xlane.f32.xlu1 %v257_v62 }
 0x221   :  { %v234_v12 = vadd.f32 %v233_v0, %v2502_v7  ;;  %v266_v13 = vsel %vm89_vm0, %v242_v1, -inf }
 0x222   :  { %v2004_v8 = vpop.f32.mrf.mxu1 }
 0x223   :  { %v260_v21 = vsel %vm89_vm0, %v234_v12, -inf  ;;  %v245_v23 = vadd.f32 %v2004_v8, %v2516_v22 }
 0x224   :  { %252 = vmax.xlane.f32.xlu1 %v251_v4  ;;  %v236_v14 = vpop.f32.mrf.mxu1 }
 0x225   :  { %v237_v20 = vadd.f32 %v236_v14, %v2509_v15  ;;  %v269_v27 = vsel %vm89_vm0, %v245_v23, -inf }
 0x227   :  { %v263_v24 = vsel %vm89_vm0, %v237_v20, -inf }
 0x228   :  { %267 = vmax.xlane.f32.xlu1 %v266_v13 }
 0x22c   :  { %261 = vmax.xlane.f32.xlu1 %v260_v21 }
 0x230   :  { %264 = vmax.xlane.f32.xlu1 %v263_v24 }
 0x234   :  { %270 = vmax.xlane.f32.xlu1 %v269_v27 }
 0x2a3   :  { %v256_v28 = vpop.xlane.xlu0 %255 }
 0x2a4   :  { %v274_v29 = vsub.f32 %v226_v50, %v256_v28 }
 0x2a5   :  { %v250_v30 = vpop.xlane.xlu1 %249 }
 0x2a6   :  { %v284_v34 = vmul.f32 1.442695, %v274_v29  ;;  %v272_v35 = vsub.f32 %v218_v53, %v250_v30 }
 0x2a8   :  { %2159 = vpow2.f32 %v284_v34  ;;  %v280_v36 = vmul.f32 1.442695, %v272_v35 }
 0x2a9   :  { %v259_v37 = vpop.xlane.xlu1 %258 }
 0x2aa   :  { %2161 = vpow2.f32 %v280_v36  ;;  %v275_v38 = vsub.f32 %v229_v56, %v259_v37 }
 0x2ac   :  { %v286_v39 = vmul.f32 1.442695, %v275_v38 }
 0x2ad   :  { %v253_v40 = vpop.xlane.xlu1 %252 }
 0x2ae   :  { %2163 = vpow2.f32 %v286_v39  ;;  %v273_v42 = vsub.f32 %v221_v61, %v253_v40 }
 0x2b0   :  { %v282_v43 = vmul.f32 1.442695, %v273_v42 }
 0x2b1   :  { %v268_v44 = vpop.xlane.xlu1 %267 }
 0x2b2   :  { %2165 = vpow2.f32 %v282_v43  ;;  %v278_v45 = vsub.f32 %v242_v1, %v268_v44 }
 0x2b4   :  { %v292_v46 = vmul.f32 1.442695, %v278_v45 }
 0x2b5   :  { %v2521_v48 = vpop.eup %2159  ;;  %v262_v50 = vpop.xlane.xlu1 %261 }
 0x2b6   :  { %2167 = vpow2.f32 %v292_v46  ;;  %v276_v51 = vsub.f32 %v234_v12, %v262_v50  ;;  %v302_v53 = vsel %vm89_vm0, %v2521_v48, 0.0  ;;  %v2134_v50 = vld [vmem:[%s2979_s4 + $0x1c] ss:$12 sps:$4 sm:$0xff]  }
 0x2b7   :  { %v2162_v54 = vpop.eup %2161  ;;  %303 = vadd.xlane.f32.xlu1 %v302_v53 }
 0x2b8   :  { %v288_v55 = vmul.f32 1.442695, %v276_v51  ;;  %v296_v57 = vsel %vm89_vm0, %v2162_v54, 0.0 }
 0x2b9   :  { %v265_v56 = vpop.xlane.xlu1 %264 }
 0x2ba   :  { %2169 = vpow2.f32 %v288_v55  ;;  %v277_v60 = vsub.f32 %v237_v20, %v265_v56 }
 0x2bb   :  { %v2164_v58 = vpop.eup %2163  ;;  %297 = vadd.xlane.f32.xlu1 %v296_v57 }
 0x2bc   :  { %v305_v61 = vsel %vm89_vm0, %v2164_v58, 0.0  ;;  %v290_v4 = vmul.f32 1.442695, %v277_v60 }
 0x2bd   :  { %306 = vadd.xlane.f32.xlu0 %v305_v61  ;;  %v271_v62 = vpop.xlane.xlu1 %270 }
 0x2be   :  { %v279_v0 = vsub.f32 %v245_v23, %v271_v62 }
 0x2bf   :  { %v2166_v1 = vpop.eup %2165 }
 0x2c0   :  { %v294_v8 = vmul.f32 1.442695, %v279_v0  ;;  %v299_v12 = vsel %vm89_vm0, %v2166_v1, 0.0 }
 0x2c1   :  { %300 = vadd.xlane.f32.xlu1 %v299_v12 }
 0x2c2   :  { %2171 = vpow2.f32 %v294_v8 }
 0x2c3   :  { %v2168_v13 = vpop.eup %2167  ;;  %2173 = vpow2.f32 %v290_v4 }
 0x2c4   :  { %v314_v14 = vsel %vm89_vm0, %v2168_v13, 0.0 }
 0x2c5   :  { %315 = vadd.xlane.f32.xlu1 %v314_v14 }
 0x2c7   :  { %v2170_v21 = vpop.eup %2169 }
 0x2c8   :  { %v308_v20 = vsel %vm89_vm0, %v2170_v21, 0.0 }
 0x2c9   :  { %309 = vadd.xlane.f32.xlu1 %v308_v20 }
 0x2cf   :  { %v2172_v24 = vpop.eup %2171 }
 0x2d0   :  { %v317_v27 = vsel %vm89_vm0, %v2172_v24, 0.0  ;;  %v2174_v23 = vpop.eup %2173 }
 0x2d1   :  { %318 = vadd.xlane.f32.xlu0 %v317_v27  ;;  %v311_v28 = vsel %vm89_vm0, %v2174_v23, 0.0 }
 0x2d5   :  { %312 = vadd.xlane.f32.xlu0 %v311_v28 }
 0x2da   :  { %342 = vrot.lane.b32.xlu1 %v2435_v31, %s2302_s1 }
 0x2eb   :  { %340 = vrot.lane.b32.xlu0 %v2453_v41, %s2302_s1 }
 0x340   :  { %v304_v29 = vpop.xlane.xlu1 %303 }
 0x344   :  { %v298_v30 = vpop.xlane.xlu1 %297 }
 0x345   :  { %2175 = vrcp.f32 %v298_v30 }
 0x346   :  { %v307_v35 = vpop.xlane.xlu0 %306 }
 0x34a   :  { %v301_v34 = vpop.xlane.xlu1 %300 }
 0x34b   :  { %2177 = vrcp.f32 %v301_v34 }
 0x34c   :  { %2179 = vrcp.f32 %v307_v35 }
 0x34d   :  { %2181 = vrcp.f32 %v304_v29 }
 0x34e   :  { %v316_v36 = vpop.xlane.xlu1 %315 }
 0x352   :  { %v310_v37 = vpop.xlane.xlu1 %309  ;;  %v2176_v38 = vpop.eup %2175 }
 0x353   :  { %v328_v42 = vmul.f32 %v2176_v38, %v2162_v54 }
 0x356   :  { %v343_v39 = vpop.permute.xlu1 %342 }
 0x357   :  { %2005 = vmatprep.subr.bf16.mxu0 %v343_v39 }
 0x358   :  { %v2178_v40 = vpop.eup %2177  ;;  %2006 = vmatpush3.bf16.msra.mxu0 %v343_v39 }
 0x359   :  { %v329_v31 = vmul.f32 %v2178_v40, %v2166_v1  ;;  %v2180_v41 = vpop.eup %2179 }
 0x35a   :  { %v319_v43 = vpop.xlane.xlu0 %318  ;;  %v2182_v46 = vpop.eup %2181  ;;  %v331_v51 = vmul.f32 %v2180_v41, %v2164_v58 }
 0x35b   :  { %v336_v44 = vpack.c.bf16 %v329_v31, %v328_v42  ;;  %2183 = vrcp.f32 %v319_v43  ;;  %v330_v54 = vmul.f32 %v2182_v46, %v2521_v48  ;;  %v2137_v48 = vld [vmem:[%s2979_s4 + $0x4] ss:$12 sps:$4 sm:$0xff]  }
 0x35c   :  { %2185 = vrcp.f32 %v310_v37 }
 0x35d   :  { %2009 = vmatprep.mubr.msk.bf16.mxu0 %vm89_vm0, %v336_v44  ;;  %2187 = vrcp.f32 %v316_v36  ;;  %v337_v55 = vpack.c.bf16 %v331_v51, %v330_v54 }
 0x35e   :  { %v313_v45 = vpop.xlane.xlu0 %312 }
 0x35f   :  { %2189 = vrcp.f32 %v313_v45 }
 0x362   :  { %v341_v53 = vpop.permute.xlu0 %340 }
 0x363   :  { %2007 = vmatprep.subr.bf16.mxu0 %v341_v53 }
 0x364   :  { %2008 = vmatpush3.bf16.msra.mxu0 %v341_v53 }
 0x365   :  { %2017 = vmatprep.subr.bf16.mxu0 %v2134_v50 }
 0x367   :  { %2010 = vmatmul.mubr.msk.bf16.vlgmr.msra.gmra.mxu0 %vm89_vm0, %v337_v55 }
 0x368   :  { %2018 = vmatpush3.bf16.msra.mxu0 %v2134_v50  ;;  %v2184_v56 = vpop.eup %2183 }
 0x369   :  { %v2186_v57 = vpop.eup %2185  ;;  %v335_v62 = vmul.f32 %v2184_v56, %v2172_v24  ;;  %2019 = vmatprep.subr.bf16.mxu0 %v2137_v48  ;;  %v510_v56 = vsub.s32 1, %v2390_v9 }
 0x36a   :  { %v2188_v60 = vpop.eup %2187  ;;  %v332_v0 = vmul.f32 %v2186_v57, %v2170_v21 }
 0x36b   :  { %v334_v4 = vmul.f32 %v2188_v60, %v2168_v13  ;;  %v511_v57 = vrot.slane %v2396_v11, %v510_v56 }
 0x36c   :  { %v2190_v61 = vpop.eup %2189  ;;  %2020 = vmatpush3.bf16.msra.mxu0 %v2137_v48 }
 0x36d   :  { %v333_v1 = vmul.f32 %v2190_v61, %v2174_v23  ;;  %v339_v58 = vpack.c.bf16 %v335_v62, %v334_v4 }
 0x36f   :  { %v338_v8 = vpack.c.bf16 %v333_v1, %v332_v0 }
 0x371   :  { %2013 = vmatprep.mubr.msk.bf16.mxu0 %vm89_vm0, %v338_v8 }
 0x372   :  { %2014 = vmatmul.mubr.msk.bf16.gmra.mxu0 %vm89_vm0, %v339_v58 }
 0x427   :  { %v2011_v12 = vpop.f32.mrf.mxu0 }
 0x428   :  { %v425_v36 = vmul.f32 %v2011_v12, %v2404_v16 }
 0x429   :  { %v392_v14 = vpop.f32.mrf.mxu0 }
 0x42a   :  { %v423_v30 = vmul.f32 %v392_v14, %v2440_v32  ;;  %v437_v46 = vsel %vm89_vm0, %v425_v36, 0.0 }
 0x42b   :  { %v2012_v20 = vpop.f32.mrf.mxu0 }
 0x42c   :  { %v426_v23 = vmul.f32 %v2012_v20, %v2414_v18  ;;  %v431_v43 = vsel %vm89_vm0, %v423_v30, 0.0 }
 0x42d   :  { %v395_v27 = vpop.f32.mrf.mxu0 }
 0x42e   :  { %v424_v34 = vmul.f32 %v395_v27, %v2445_v33  ;;  %v440_v42 = vsel %vm89_vm0, %v426_v23, 0.0 }
 0x430   :  { %v434_v44 = vsel %vm89_vm0, %v424_v34, 0.0  ;;  %v2138_v34 = vld [vmem:[%s2979_s4 + $0x20] ss:$12 sps:$4 sm:$0xff]  }
 0x431   :  { %2025 = vmatprep.subr.bf16.mxu1 %v2138_v34 }
 0x432   :  { %v2015_v24 = vpop.f32.mrf.mxu0  ;;  %2026 = vmatpush3.bf16.msra.mxu1 %v2138_v34 }
 0x433   :  { %v429_v28 = vmul.f32 %v2015_v24, %v2409_v17 }
 0x434   :  { %v408_v21 = vpop.f32.mrf.mxu0 }
 0x435   :  { %v427_v13 = vmul.f32 %v408_v21, %v2426_v25  ;;  %v438_v31 = vsel %vm89_vm0, %v429_v28, 0.0 }
 0x436   :  { %v2016_v29 = vpop.f32.mrf.mxu0  ;;  %v439_v53 = vadd.f32 %v438_v31, %v437_v46 }
 0x437   :  { %v430_v35 = vmul.f32 %v2016_v29, %v2419_v19  ;;  %v432_v38 = vsel %vm89_vm0, %v427_v13, 0.0 }
 0x438   :  { %v411_v37 = vpop.f32.mrf.mxu0  ;;  %v433_v50 = vadd.f32 %v432_v38, %v431_v43 }
 0x439   :  { %v441_v39 = vsel %vm89_vm0, %v430_v35, 0.0  ;;  %v428_v40 = vmul.f32 %v411_v37, %v2431_v26  ;;  %v2139_v35 = vld [vmem:[%s2979_s4 + $0x8] ss:$12 sps:$4 sm:$0xff]  }
 0x43a   :  { %v442_v41 = vadd.f32 %v441_v39, %v440_v42  ;;  %2027 = vmatprep.subr.bf16.mxu1 %v2139_v35 }
 0x43b   :  { %v435_v45 = vsel %vm89_vm0, %v428_v40, 0.0  ;;  %2028 = vmatpush3.bf16.msra.mxu1 %v2139_v35 }
 0x43c   :  { %v436_v51 = vadd.f32 %v435_v45, %v434_v44  ;;  %v444_v55 = vpack.c.bf16 %v442_v41, %v439_v53 }
 0x43e   :  { %v443_v54 = vpack.c.bf16 %v436_v51, %v433_v50 }
 0x440   :  { %2021 = vmatprep.mubr.msk.bf16.mxu0 %vm89_vm0, %v443_v54 }
 0x441   :  { %2022 = vmatmul.mubr.msk.bf16.vlgmr.msra.gmra.mxu0 %vm89_vm0, %v444_v55 }
 0x501   :  { %v2023_v60 = vpop.f32.mrf.mxu0 }
 0x502   :  { %v514_v61 = vadd.f32 %v2023_v60, %v511_v57 }
 0x503   :  { %v493_v62 = vpop.f32.mrf.mxu0 }
 0x504   :  { %v2570_v0 = vadd.f32 %v514_v61, %v2379_v5  ;;  %v512_v1 = vadd.f32 %v511_v57, %v493_v62 }
 0x505   :  { %v2024_v4 = vpop.f32.mrf.mxu0 }
 0x506   :  { %v2573_v8 = vadd.f32 %v512_v1, %v2367_v2  ;;  %v515_v58 = vadd.f32 %v2024_v4, %v511_v57  ;;  %v526_v48 = vsel %vm89_vm0, %v2570_v0, 0.0 }
 0x507   :  { %527 = vadd.xlane.f32.xlu1 %v526_v48  ;;  %v496_v12 = vpop.f32.mrf.mxu0 }
 0x508   :  { %v2578_v14 = vadd.f32 %v515_v58, %v2384_v6  ;;  %v513_v20 = vadd.f32 %v511_v57, %v496_v12  ;;  %v520_v5 = vsel %vm89_vm0, %v2573_v8, 0.0  ;;  %v532_v24 = vmul.f32 %v2573_v8, %v2573_v8 }
 0x50a   :  { %v2581_v27 = vadd.f32 %v513_v20, %v2372_v3  ;;  %v529_v2 = vsel %vm89_vm0, %v2578_v14, 0.0  ;;  %v536_v21 = vsel %vm89_vm0, %v532_v24, 0.0  ;;  %v534_v3 = vmul.f32 %v2570_v0, %v2570_v0 }
 0x50b   :  { %521 = vadd.xlane.f32.xlu1 %v520_v5  ;;  %530 = vadd.xlane.f32.xlu0 %v529_v2  ;;  %v535_v29 = vmul.f32 %v2578_v14, %v2578_v14 }
 0x50c   :  { %v523_v6 = vsel %vm89_vm0, %v2581_v27, 0.0  ;;  %v533_v13 = vmul.f32 %v2581_v27, %v2581_v27  ;;  %v542_v23 = vsel %vm89_vm0, %v534_v3, 0.0  ;;  %v586_v3 = vsub.s32 2, %v2390_v9 }
 0x50d   :  { %v545_v30 = vsel %vm89_vm0, %v535_v29, 0.0 }
 0x50e   :  { %v539_v28 = vsel %vm89_vm0, %v533_v13, 0.0  ;;  %v587_v29 = vrot.slane %v2396_v11, %v586_v3 }
 0x50f   :  { %537 = vadd.xlane.f32.xlu1 %v536_v21  ;;  %524 = vadd.xlane.f32.xlu0 %v523_v6 }
 0x513   :  { %543 = vadd.xlane.f32.xlu1 %v542_v23  ;;  %540 = vadd.xlane.f32.xlu0 %v539_v28 }
 0x517   :  { %546 = vadd.xlane.f32.xlu0 %v545_v30  ;;  %v594_v30 = vsub.s32 3, %v2390_v9 }
 0x590   :  { %v528_v36 = vpop.xlane.xlu1 %527 }
 0x591   :  { %v550_v40 = vmul.f32 0.03125, %v528_v36 }
 0x593   :  { %v558_v46 = vmul.f32 %v550_v40, %v550_v40  ;;  %v570_v34 = vsub.f32 %v2570_v0, %v550_v40 }
 0x594   :  { %v522_v37 = vpop.xlane.xlu1 %521  ;;  %v531_v38 = vpop.xlane.xlu0 %530 }
 0x595   :  { %v548_v39 = vmul.f32 0.03125, %v522_v37  ;;  %v551_v50 = vmul.f32 0.03125, %v531_v38 }
 0x597   :  { %v556_v43 = vmul.f32 %v548_v39, %v548_v39  ;;  %v559_v4 = vmul.f32 %v551_v50, %v551_v50  ;;  %v568_v23 = vsub.f32 %v2573_v8, %v548_v39  ;;  %v595_v8 = vrot.slane %v2396_v11, %v594_v30 }
 0x598   :  { %v538_v42 = vpop.xlane.xlu1 %537  ;;  %v525_v31 = vpop.xlane.xlu0 %524  ;;  %v571_v39 = vsub.f32 %v2578_v14, %v551_v50  ;;  %v2140_v50 = vld [vmem:[%s2980_s5 + $0x18] sm:$0xff]  }
 0x599   :  { %v552_v44 = vmul.f32 0.03125, %v538_v42  ;;  %v549_v41 = vmul.f32 0.03125, %v525_v31  ;;  %2033 = vmatprep.subr.bf16.mxu0 %v2140_v50 }
 0x59a   :  { %2034 = vmatpush3.bf16.msra.mxu0 %v2140_v50 }
 0x59b   :  { %v560_v45 = vsub.f32 %v552_v44, %v556_v43  ;;  %v557_v55 = vmul.f32 %v549_v41, %v549_v41  ;;  %v569_v36 = vsub.f32 %v2581_v27, %v549_v41 }
 0x59c   :  { %v544_v51 = vpop.xlane.xlu1 %543  ;;  %v541_v53 = vpop.xlane.xlu0 %540 }
 0x59d   :  { %v564_v54 = vmax.f32 %v560_v45, 0.0  ;;  %v554_v57 = vmul.f32 0.03125, %v544_v51  ;;  %v553_v60 = vmul.f32 0.03125, %v541_v53 }
 0x59f   :  { %v572_v61 = vadd.f32 1e-12, %v564_v54  ;;  %v562_v62 = vsub.f32 %v554_v57, %v558_v46  ;;  %v561_v1 = vsub.f32 %v553_v60, %v557_v55  ;;  %v2141_v54 = vld [vmem:[%s2980_s5 + $0x10] sm:$0xff]   ;;  %v2142_v55 = vld [vmem:[%s2980_s5 + $0x8] sm:$0xff]   ;;  %v2143_v57 = vld [vmem:[%s2980_s5] sm:$0xff]   ;;  %v604_v60 = vsub.s32 4, %v2390_v9 }
 0x5a0   :  { %v547_v58 = vpop.xlane.xlu0 %546  ;;  %2035 = vmatprep.subr.bf16.mxu0 %v2141_v54 }
 0x5a1   :  { %2191 = vrsqrt.f32 %v572_v61  ;;  %v566_v48 = vmax.f32 %v562_v62, 0.0  ;;  %v565_v12 = vmax.f32 %v561_v1, 0.0  ;;  %v555_v20 = vmul.f32 0.03125, %v547_v58  ;;  %2036 = vmatpush3.bf16.msra.mxu0 %v2141_v54 }
 0x5a2   :  { %2037 = vmatprep.subr.bf16.mxu0 %v2142_v55  ;;  %v605_v61 = vrot.slane %v2396_v11, %v604_v60 }
 0x5a3   :  { %v574_v5 = vadd.f32 1e-12, %v566_v48  ;;  %v573_v2 = vadd.f32 1e-12, %v565_v12  ;;  %v563_v24 = vsub.f32 %v555_v20, %v559_v4 }
 0x5a5   :  { %2193 = vrsqrt.f32 %v574_v5  ;;  %v567_v21 = vmax.f32 %v563_v24, 0.0  ;;  %2038 = vmatpush3.bf16.msra.mxu0 %v2142_v55 }
 0x5a6   :  { %2195 = vrsqrt.f32 %v573_v2  ;;  %2039 = vmatprep.subr.bf16.mxu0 %v2143_v57 }
 0x5a7   :  { %v575_v6 = vadd.f32 1e-12, %v567_v21 }
 0x5a9   :  { %2197 = vrsqrt.f32 %v575_v6  ;;  %2040 = vmatpush3.bf16.msra.mxu0 %v2143_v57 }
 0x5ae   :  { %v2192_v13 = vpop.eup %2191 }
 0x5af   :  { %v580_v28 = vmul.f32 %v2192_v13, %v568_v23 }
 0x5b1   :  { %v588_v31 = vmul.f32 %v587_v29, %v580_v28 }
 0x5b2   :  { %v2194_v35 = vpop.eup %2193 }
 0x5b3   :  { %v2196_v37 = vpop.eup %2195  ;;  %v582_v38 = vmul.f32 %v2194_v35, %v570_v34  ;;  %v2619_v51 = vadd.f32 %v595_v8, %v588_v31 }
 0x5b4   :  { %v581_v42 = vmul.f32 %v2196_v37, %v569_v36 }
 0x5b5   :  { %v590_v46 = vmul.f32 %v587_v29, %v582_v38 }
 0x5b6   :  { %v2198_v43 = vpop.eup %2197  ;;  %v589_v44 = vmul.f32 %v587_v29, %v581_v42 }
 0x5b7   :  { %v583_v45 = vmul.f32 %v2198_v43, %v571_v39  ;;  %v2625_v41 = vadd.f32 %v595_v8, %v590_v46 }
 0x5b8   :  { %v2621_v0 = vadd.f32 %v595_v8, %v589_v44 }
 0x5b9   :  { %v591_v40 = vmul.f32 %v587_v29, %v583_v45 }
 0x5ba   :  { %v600_v27 = vpack.c.bf16 %v2621_v0, %v2619_v51 }
 0x5bb   :  { %v2627_v53 = vadd.f32 %v595_v8, %v591_v40 }
 0x5bc   :  { %2029 = vmatprep.mubr.msk.bf16.mxu1 %vm89_vm0, %v600_v27 }
 0x5bd   :  { %v601_v14 = vpack.c.bf16 %v2627_v53, %v2625_v41 }
 0x5bf   :  { %2030 = vmatmul.mubr.msk.bf16.vlgmr.msra.gmra.mxu1 %vm89_vm0, %v601_v14 }
 0x67f   :  { %v2031_v62 = vpop.f32.mrf.mxu1 }
 0x680   :  { %v667_v1 = vadd.f32 %v2031_v62, %v605_v61 }
 0x681   :  { %v658_v4 = vpop.f32.mrf.mxu1 }
 0x682   :  { %v675_v58 = vmul.f32 %v667_v1, %v667_v1  ;;  %v659_v48 = vadd.f32 %v658_v4, %v605_v61 }
 0x683   :  { %v2032_v12 = vpop.f32.mrf.mxu1 }
 0x684   :  { %v679_v20 = vmul.f32 %v675_v58, %v667_v1  ;;  %v673_v5 = vmul.f32 %v659_v48, %v659_v48  ;;  %v670_v2 = vadd.f32 %v2032_v12, %v605_v61 }
 0x685   :  { %v661_v24 = vpop.f32.mrf.mxu1 }
 0x686   :  { %v683_v21 = vmul.f32 0.044715, %v679_v20  ;;  %v677_v6 = vmul.f32 %v673_v5, %v659_v48  ;;  %v676_v13 = vmul.f32 %v670_v2, %v670_v2  ;;  %v662_v23 = vadd.f32 %v661_v24, %v605_v61 }
 0x688   :  { %v687_v28 = vadd.f32 %v683_v21, %v667_v1  ;;  %v681_v29 = vmul.f32 0.044715, %v677_v6  ;;  %v680_v34 = vmul.f32 %v676_v13, %v670_v2  ;;  %v674_v35 = vmul.f32 %v662_v23, %v662_v23 }
 0x689   :  { %v713_v13 = vsub.s32 5, %v2390_v9 }
 0x68a   :  { %v691_v36 = vmul.f32 0.7978846, %v687_v28  ;;  %v685_v37 = vadd.f32 %v681_v29, %v659_v48  ;;  %v684_v38 = vmul.f32 0.044715, %v680_v34  ;;  %v678_v42 = vmul.f32 %v674_v35, %v662_v23 }
 0x68b   :  { %v714_v28 = vrot.slane %v2396_v11, %v713_v13 }
 0x68c   :  { %v689_v31 = vmul.f32 0.7978846, %v685_v37  ;;  %v688_v8 = vadd.f32 %v684_v38, %v670_v2  ;;  %v682_v39 = vmul.f32 0.044715, %v678_v42  ;;  %2199 = vtanh.f32 %v691_v36 }
 0x68e   :  { %2201 = vtanh.f32 %v689_v31  ;;  %v692_v43 = vmul.f32 0.7978846, %v688_v8  ;;  %v686_v44 = vadd.f32 %v682_v39, %v662_v23 }
 0x690   :  { %2203 = vtanh.f32 %v692_v43  ;;  %v690_v45 = vmul.f32 0.7978846, %v686_v44 }
 0x692   :  { %2205 = vtanh.f32 %v690_v45 }
 0x699   :  { %v2200_v46 = vpop.eup %2199 }
 0x69a   :  { %v699_v50 = vadd.f32 1.0, %v2200_v46 }
 0x69b   :  { %v2202_v40 = vpop.eup %2201 }
 0x69c   :  { %v697_v27 = vadd.f32 1.0, %v2202_v40  ;;  %v703_v4 = vmul.f32 0.5, %v699_v50  ;;  %v2146_v50 = vld [vmem:[%s2979_s4 + $0x30] ss:$12 sps:$4 sm:$0xff]  }
 0x69d   :  { %v2204_v14 = vpop.eup %2203 }
 0x69e   :  { %v700_v54 = vadd.f32 1.0, %v2204_v14  ;;  %v701_v57 = vmul.f32 0.5, %v697_v27  ;;  %v707_v24 = vmul.f32 %v703_v4, %v667_v1  ;;  %v2144_v14 = vld [vmem:[%s2979_s4 + $0x48] ss:$12 sps:$4 sm:$0xff]  }
 0x69f   :  { %v2206_v55 = vpop.eup %2205  ;;  %2045 = vmatprep.subr.bf16.mxu1 %v2144_v14 }
 0x6a0   :  { %v704_v61 = vmul.f32 0.5, %v700_v54  ;;  %v698_v62 = vadd.f32 1.0, %v2206_v55  ;;  %v705_v20 = vmul.f32 %v701_v57, %v659_v48  ;;  %2046 = vmatpush3.bf16.msra.mxu1 %v2144_v14 }
 0x6a1   :  { %2047 = vmatprep.subr.bf16.mxu1 %v2146_v50 }
 0x6a2   :  { %v702_v58 = vmul.f32 0.5, %v698_v62  ;;  %v708_v12 = vmul.f32 %v704_v61, %v670_v2 }
 0x6a4   :  { %v706_v5 = vmul.f32 %v702_v58, %v662_v23  ;;  %v710_v6 = vpack.c.bf16 %v708_v12, %v707_v24  ;;  %2048 = vmatpush3.bf16.msra.mxu1 %v2146_v50 }
 0x6a6   :  { %v709_v21 = vpack.c.bf16 %v706_v5, %v705_v20 }
 0x6a8   :  { %2041 = vmatprep.mubr.msk.bf16.mxu0 %vm739_vm1, %v709_v21 }
 0x6a9   :  { %2042 = vmatmul.mubr.msk.bf16.vlgmr.msra.gmra.mxu0 %vm739_vm1, %v710_v6 }
 0x769   :  { %v2043_v29 = vpop.f32.mrf.mxu0 }
 0x76a   :  { %v789_v34 = vadd.f32 %v2043_v29, %v714_v28 }
 0x76b   :  { %v780_v35 = vpop.f32.mrf.mxu0 }
 0x76c   :  { %v2656_v48 = vadd.f32 %v789_v34, %v2625_v41  ;;  %v781_v1 = vadd.f32 %v780_v35, %v714_v28 }
 0x76d   :  { %v2044_v2 = vpop.f32.mrf.mxu0 }
 0x76e   :  { %v2659_v23 = vadd.f32 %v781_v1, %v2619_v51  ;;  %v792_v36 = vadd.f32 %v2044_v2, %v714_v28  ;;  %v805_v37 = vsel %vm89_vm0, %v2656_v48, 0.0  ;;  %v813_v44 = vmul.f32 %v2656_v48, %v2656_v48 }
 0x76f   :  { %806 = vadd.xlane.f32.xlu1 %v805_v37  ;;  %v783_v38 = vpop.f32.mrf.mxu0 }
 0x770   :  { %v2664_v42 = vadd.f32 %v792_v36, %v2627_v53  ;;  %v784_v31 = vadd.f32 %v783_v38, %v714_v28  ;;  %v799_v51 = vsel %vm89_vm0, %v2659_v23, 0.0  ;;  %v811_v39 = vmul.f32 %v2659_v23, %v2659_v23 }
 0x771   :  { %v821_v46 = vsel %vm89_vm0, %v813_v44, 0.0 }
 0x772   :  { %v2667_v8 = vadd.f32 %v784_v31, %v2621_v0  ;;  %v808_v41 = vsel %vm89_vm0, %v2664_v42, 0.0  ;;  %v815_v53 = vsel %vm89_vm0, %v811_v39, 0.0  ;;  %v814_v40 = vmul.f32 %v2664_v42, %v2664_v42 }
 0x773   :  { %809 = vadd.xlane.f32.xlu0 %v808_v41  ;;  %800 = vadd.xlane.f32.xlu1 %v799_v51 }
 0x774   :  { %v802_v43 = vsel %vm89_vm0, %v2667_v8, 0.0  ;;  %v812_v0 = vmul.f32 %v2667_v8, %v2667_v8  ;;  %v824_v27 = vsel %vm89_vm0, %v814_v40, 0.0  ;;  %v865_v40 = vsub.s32 6, %v2390_v9 }
 0x776   :  { %v818_v45 = vsel %vm89_vm0, %v812_v0, 0.0 }
 0x777   :  { %803 = vadd.xlane.f32.xlu0 %v802_v43  ;;  %816 = vadd.xlane.f32.xlu1 %v815_v53 }
 0x77b   :  { %819 = vadd.xlane.f32.xlu0 %v818_v45  ;;  %822 = vadd.xlane.f32.xlu1 %v821_v46 }
 0x77f   :  { %825 = vadd.xlane.f32.xlu0 %v824_v27 }
 0x7f8   :  { %v807_v54 = vpop.xlane.xlu1 %806 }
 0x7f9   :  { %v829_v62 = vmul.f32 0.03125, %v807_v54  ;;  %v866_v54 = vrot.slane %v2396_v11, %v865_v40 }
 0x7fb   :  { %v837_v21 = vmul.f32 %v829_v62, %v829_v62 }
 0x7fc   :  { %v810_v55 = vpop.xlane.xlu0 %809  ;;  %v801_v57 = vpop.xlane.xlu1 %800 }
 0x7fd   :  { %v827_v61 = vmul.f32 0.03125, %v801_v57  ;;  %v830_v6 = vmul.f32 0.03125, %v810_v55  ;;  %v873_v55 = vsub.s32 7, %v2390_v9 }
 0x7ff   :  { %v835_v12 = vmul.f32 %v827_v61, %v827_v61  ;;  %v838_v31 = vmul.f32 %v830_v6, %v830_v6  ;;  %v847_v27 = vsub.f32 %v2659_v23, %v827_v61  ;;  %v874_v23 = vrot.slane %v2396_v11, %v873_v55 }
 0x800   :  { %v804_v4 = vpop.xlane.xlu0 %803  ;;  %v817_v58 = vpop.xlane.xlu1 %816 }
 0x801   :  { %v828_v20 = vmul.f32 0.03125, %v804_v4  ;;  %v831_v5 = vmul.f32 0.03125, %v817_v58  ;;  %v849_v58 = vsub.f32 %v2656_v48, %v829_v62 }
 0x803   :  { %v839_v24 = vsub.f32 %v831_v5, %v835_v12  ;;  %v836_v34 = vmul.f32 %v828_v20, %v828_v20  ;;  %v848_v57 = vsub.f32 %v2667_v8, %v828_v20 }
 0x804   :  { %v820_v28 = vpop.xlane.xlu0 %819  ;;  %v823_v29 = vpop.xlane.xlu1 %822 }
 0x805   :  { %v843_v35 = vmax.f32 %v839_v24, 0.0  ;;  %v832_v1 = vmul.f32 0.03125, %v820_v28  ;;  %v833_v2 = vmul.f32 0.03125, %v823_v29 }
 0x807   :  { %v851_v36 = vadd.f32 1e-12, %v843_v35  ;;  %v840_v37 = vsub.f32 %v832_v1, %v836_v34  ;;  %v841_v38 = vsub.f32 %v833_v2, %v837_v21  ;;  %v850_v21 = vsub.f32 %v2664_v42, %v830_v6  ;;  %v2722_v6 = vld [vmem:[%s2981_s6 + $0x8] sm:$0xff] }
 0x808   :  { %v826_v41 = vpop.xlane.xlu0 %825  ;;  %v904_v2 = vrot.slane %v2722_v6, %v75_v10 }
 0x809   :  { %2207 = vrsqrt.f32 %v851_v36  ;;  %v844_v51 = vmax.f32 %v840_v37, 0.0  ;;  %v845_v39 = vmax.f32 %v841_v38, 0.0  ;;  %v834_v43 = vmul.f32 0.03125, %v826_v41 }
 0x80b   :  { %v852_v53 = vadd.f32 1e-12, %v844_v51  ;;  %v853_v0 = vadd.f32 1e-12, %v845_v39  ;;  %v842_v44 = vsub.f32 %v834_v43, %v838_v31 }
 0x80d   :  { %2209 = vrsqrt.f32 %v852_v53  ;;  %v846_v45 = vmax.f32 %v842_v44, 0.0 }
 0x80e   :  { %2211 = vrsqrt.f32 %v853_v0 }
 0x80f   :  { %v854_v46 = vadd.f32 1e-12, %v846_v45 }
 0x811   :  { %2213 = vrsqrt.f32 %v854_v46 }
 0x816   :  { %v2208_v14 = vpop.eup %2207 }
 0x817   :  { %v859_v50 = vmul.f32 %v2208_v14, %v847_v27 }
 0x819   :  { %v867_v24 = vmul.f32 %v866_v54, %v859_v50 }
 0x81a   :  { %v2210_v4 = vpop.eup %2209 }
 0x81b   :  { %v2212_v12 = vpop.eup %2211  ;;  %v860_v5 = vmul.f32 %v2210_v4, %v848_v57  ;;  %v2705_v34 = vadd.f32 %v874_v23, %v867_v24 }
 0x81c   :  { %v861_v61 = vmul.f32 %v2212_v12, %v849_v58 }
 0x81d   :  { %v868_v28 = vmul.f32 %v866_v54, %v860_v5 }
 0x81e   :  { %v2214_v29 = vpop.eup %2213  ;;  %v869_v20 = vmul.f32 %v866_v54, %v861_v61 }
 0x81f   :  { %v2707_v35 = vadd.f32 %v874_v23, %v868_v28  ;;  %v862_v8 = vmul.f32 %v2214_v29, %v850_v21 }
 0x820   :  { %v2712_v1 = vadd.f32 %v874_v23, %v869_v20 }
 0x821   :  { %v899_v48 = vpack.c.bf16 %v2707_v35, %v2705_v34  ;;  %v870_v62 = vmul.f32 %v866_v54, %v862_v8 }
 0x823   :  { %2049 = vmatprep.mubr.msk.bf16.mxu1 %vm89_vm0, %v899_v48  ;;  %v2714_v11 = vadd.f32 %v874_v23, %v870_v62 }
 0x825   :  { %v900_v42 = vpack.c.bf16 %v2714_v11, %v2712_v1 }
 0x827   :  { %2050 = vmatmul.mubr.msk.bf16.vlgmr.msra.gmra.mxu1 %vm89_vm0, %v900_v42 }
 0x8e7   :  { %v2051_v36 = vpop.f32.mrf.mxu1 }
 0x8e8   :  { %v966_v37 = vadd.f32 %v2051_v36, %v904_v2 }
 0x8e9   :  { %v957_v38 = vpop.f32.mrf.mxu1 }
 0x8ea   :  { %v958_v31 = vadd.f32 %v957_v38, %v904_v2  ;;  %v974_v39 = vmul.f32 %v966_v37, %v2404_v16  ;;  %v978_v43 = vmul.f32 %v966_v37, %v2409_v17 }
 0x8eb   :  { %v2052_v41 = vpop.f32.mrf.mxu1 }
 0x8ec   :  { %v969_v51 = vadd.f32 %v2052_v41, %v904_v2  ;;  %v972_v10 = vmul.f32 %v958_v31, %v2440_v32  ;;  %v976_v27 = vmul.f32 %v958_v31, %v2426_v25 }
 0x8ed   :  { %v960_v53 = vpop.f32.mrf.mxu1 }
 0x8ee   :  { %v975_v0 = vmul.f32 %v969_v51, %v2414_v18  ;;  %v979_v44 = vmul.f32 %v969_v51, %v2419_v19  ;;  %v961_v45 = vadd.f32 %v960_v53, %v904_v2  ;;  %v2731_v46 = vpack.c.bf16 %v969_v51, %v966_v37 }
 0x8f0   :  { %v981_v14 = vpack.c.bf16 %v975_v0, %v974_v39  ;;  %v983_v50 = vpack.c.bf16 %v979_v44, %v978_v43  ;;  %v973_v54 = vmul.f32 %v961_v45, %v2445_v33  ;;  %v977_v16 = vmul.f32 %v961_v45, %v2431_v26  ;;  %990 = vrot.lane.b32.xlu1 %v2731_v46, %s2301_s17 }
 0x8f1   :  { %v2739_v17 = vpack.c.bf16 %v961_v45, %v958_v31 }
 0x8f2   :  { %v980_v18 = vpack.c.bf16 %v973_v54, %v972_v10  ;;  %v982_v19 = vpack.c.bf16 %v977_v16, %v976_v27 }
 0x8f3   :  { %988 = vrot.lane.b32.xlu0 %v2739_v17, %s2301_s17 }
 0x8f4   :  { %2057 = vmatprep.mubr.msk.bf16.mxu1 %vm89_vm0, %v980_v18 }
 0x962   :  { %v991_v32 = vpop.permute.xlu1 %990 }
 0x963   :  { %v1008_v25 = vsel %vm89_vm0, %v991_v32, 0  ;;  %2123 = vmatprep.subr.msk.bf16.mxu1 %vm89_vm0, %v991_v32 }
 0x964   :  { %2054 = vmatpush3.bf16.xpose.msra.mxu1 %v1008_v25 }
 0x965   :  { %v989_v33 = vpop.permute.xlu0 %988 }
 0x966   :  { %2124 = vmatprep.subr.msk.bf16.mxu1 %vm89_vm0, %v989_v33  ;;  %v1005_v26 = vsel %vm89_vm0, %v989_v33, 0 }
 0x96c   :  { %2056 = vmatpush3.bf16.xpose.msra.mxu1 %v1005_v26 }
 0x973   :  { %2058 = vmatmul.mubr.msk.bf16.vlgmr.msra.gmra.mxu1 %vm89_vm0, %v981_v14 }
 0x974   :  { %2061 = vmatprep.mubr.msk.bf16.mxu1 %vm89_vm0, %v982_v19 }
 0x97b   :  { %2062 = vmatmul.mubr.msk.bf16.gmra.mxu1 %vm89_vm0, %v983_v50 }
 0xa33   :  { %v2059_v57 = vpop.f32.mrf.mxu1 }
 0xa34   :  { %v1053_v5 = vadd.f32 %v2059_v57, %v2468_v47 }
 0xa35   :  { %v1044_v4 = vpop.f32.mrf.mxu1 }
 0xa36   :  { %v1045_v58 = vadd.f32 %v1044_v4, %v2473_v49  ;;  %v1081_v8 = vsel %vm89_vm0, %v1053_v5, -inf }
 0xa37   :  { %v2060_v12 = vpop.f32.mrf.mxu1 }
 0xa38   :  { %v1075_v24 = vsel %vm89_vm0, %v1045_v58, -inf  ;;  %v1056_v28 = vadd.f32 %v2060_v12, %v2479_v52 }
 0xa39   :  { %v1047_v23 = vpop.f32.mrf.mxu1  ;;  %1076 = vmax.xlane.f32.xlu1 %v1075_v24 }
 0xa3a   :  { %v1048_v61 = vadd.f32 %v1047_v23, %v2488_v59  ;;  %v1084_v62 = vsel %vm89_vm0, %v1056_v28, -inf }
 0xa3b   :  { %v2063_v21 = vpop.f32.mrf.mxu1 }
 0xa3c   :  { %v1078_v29 = vsel %vm89_vm0, %v1048_v61, -inf  ;;  %v1069_v47 = vadd.f32 %v2063_v21, %v2495_v63 }
 0xa3d   :  { %v1060_v20 = vpop.f32.mrf.mxu1  ;;  %1079 = vmax.xlane.f32.xlu0 %v1078_v29  ;;  %1082 = vmax.xlane.f32.xlu1 %v1081_v8 }
 0xa3e   :  { %v1061_v49 = vadd.f32 %v1060_v20, %v2502_v7  ;;  %v1093_v37 = vsel %vm89_vm0, %v1069_v47, -inf }
 0xa3f   :  { %v2064_v48 = vpop.f32.mrf.mxu1 }
 0xa40   :  { %v1087_v42 = vsel %vm89_vm0, %v1061_v49, -inf  ;;  %v1072_v2 = vadd.f32 %v2064_v48, %v2516_v22 }
 0xa41   :  { %v1063_v59 = vpop.f32.mrf.mxu1  ;;  %1085 = vmax.xlane.f32.xlu0 %v1084_v62  ;;  %1088 = vmax.xlane.f32.xlu1 %v1087_v42 }
 0xa42   :  { %v1064_v52 = vadd.f32 %v1063_v59, %v2509_v15  ;;  %v1096_v7 = vsel %vm89_vm0, %v1072_v2, -inf }
 0xa44   :  { %v1090_v36 = vsel %vm89_vm0, %v1064_v52, -inf }
 0xa45   :  { %1091 = vmax.xlane.f32.xlu0 %v1090_v36  ;;  %1094 = vmax.xlane.f32.xlu1 %v1093_v37 }
 0xa49   :  { %1097 = vmax.xlane.f32.xlu0 %v1096_v7 }
 0xac2   :  { %v1077_v63 = vpop.xlane.xlu1 %1076 }
 0xac3   :  { %v1099_v38 = vsub.f32 %v1045_v58, %v1077_v63 }
 0xac5   :  { %v1107_v53 = vmul.f32 1.442695, %v1099_v38 }
 0xac6   :  { %v1080_v31 = vpop.xlane.xlu0 %1079  ;;  %v1083_v41 = vpop.xlane.xlu1 %1082 }
 0xac7   :  { %v1101_v51 = vsub.f32 %v1053_v5, %v1083_v41  ;;  %v1100_v39 = vsub.f32 %v1048_v61, %v1080_v31 }
 0xac9   :  { %v1111_v43 = vmul.f32 1.442695, %v1101_v51  ;;  %v1109_v44 = vmul.f32 1.442695, %v1100_v39 }
 0xaca   :  { %v1086_v15 = vpop.xlane.xlu0 %1085  ;;  %v1089_v0 = vpop.xlane.xlu1 %1088 }
 0xacb   :  { %v1102_v22 = vsub.f32 %v1056_v28, %v1086_v15  ;;  %2215 = vpow2.f32 %v1111_v43  ;;  %v1103_v10 = vsub.f32 %v1061_v49, %v1089_v0 }
 0xacc   :  { %2217 = vpow2.f32 %v1107_v53 }
 0xacd   :  { %v1113_v45 = vmul.f32 1.442695, %v1102_v22  ;;  %v1115_v18 = vmul.f32 1.442695, %v1103_v10 }
 0xace   :  { %v1092_v27 = vpop.xlane.xlu0 %1091  ;;  %v1095_v14 = vpop.xlane.xlu1 %1094 }
 0xacf   :  { %2219 = vpow2.f32 %v1113_v45  ;;  %v1105_v50 = vsub.f32 %v1069_v47, %v1095_v14  ;;  %v1104_v54 = vsub.f32 %v1064_v52, %v1092_v27 }
 0xad0   :  { %2221 = vpow2.f32 %v1109_v44 }
 0xad1   :  { %v1119_v16 = vmul.f32 1.442695, %v1105_v50  ;;  %v1117_v25 = vmul.f32 1.442695, %v1104_v54 }
 0xad2   :  { %v1098_v19 = vpop.xlane.xlu0 %1097 }
 0xad3   :  { %v1106_v32 = vsub.f32 %v1072_v2, %v1098_v19  ;;  %2223 = vpow2.f32 %v1119_v16  ;;  %v2149_v19 = vld [vmem:[%s2979_s4 + $0x34] ss:$12 sps:$4 sm:$0xff]  }
 0xad4   :  { %2225 = vpow2.f32 %v1115_v18  ;;  %v2148_v18 = vld [vmem:[%s2979_s4 + $0x4c] ss:$12 sps:$4 sm:$0xff]  }
 0xad5   :  { %v1121_v33 = vmul.f32 1.442695, %v1106_v32 }
 0xad7   :  { %2227 = vpow2.f32 %v1121_v33 }
 0xad8   :  { %v2216_v26 = vpop.eup %2215  ;;  %2229 = vpow2.f32 %v1117_v25 }
 0xad9   :  { %v1129_v57 = vsel %vm89_vm0, %v2216_v26, 0.0  ;;  %v2218_v4 = vpop.eup %2217 }
 0xada   :  { %1130 = vadd.xlane.f32.xlu1 %v1129_v57  ;;  %v1123_v24 = vsel %vm89_vm0, %v2218_v4, 0.0 }
 0xadc   :  { %v2220_v58 = vpop.eup %2219 }
 0xadd   :  { %v1132_v12 = vsel %vm89_vm0, %v2220_v58, 0.0  ;;  %v2222_v5 = vpop.eup %2221 }
 0xade   :  { %1133 = vadd.xlane.f32.xlu0 %v1132_v12  ;;  %1124 = vadd.xlane.f32.xlu1 %v1123_v24  ;;  %v1126_v61 = vsel %vm89_vm0, %v2222_v5, 0.0 }
 0xae0   :  { %v2224_v23 = vpop.eup %2223 }
 0xae1   :  { %v1141_v21 = vsel %vm89_vm0, %v2224_v23, 0.0  ;;  %v2226_v28 = vpop.eup %2225 }
 0xae2   :  { %1127 = vadd.xlane.f32.xlu0 %v1126_v61  ;;  %1142 = vadd.xlane.f32.xlu1 %v1141_v21  ;;  %v1135_v49 = vsel %vm89_vm0, %v2226_v28, 0.0 }
 0xae4   :  { %v2228_v29 = vpop.eup %2227 }
 0xae5   :  { %v1144_v8 = vsel %vm89_vm0, %v2228_v29, 0.0  ;;  %v2230_v20 = vpop.eup %2229 }
 0xae6   :  { %1145 = vadd.xlane.f32.xlu0 %v1144_v8  ;;  %1136 = vadd.xlane.f32.xlu1 %v1135_v49  ;;  %v1138_v48 = vsel %vm89_vm0, %v2230_v20, 0.0  ;;  %v2275_v8 = vld [vmem:[%s2977_s2 + $0x8] sm:$0xff]  ;;  %v2276_v49 = vld [vmem:[%s2977_s2 + $0x38] sm:$0xff] }
 0xaea   :  { %1139 = vadd.xlane.f32.xlu0 %v1138_v48 }
 0xaf7   :  { %1169 = vrot.lane.b32.xlu1 %v2731_v46, %s2302_s1 }
 0xb00   :  { %1167 = vrot.lane.b32.xlu0 %v2739_v17, %s2302_s1 }
 0xb63   :  { %v1131_v47 = vpop.xlane.xlu1 %1130 }
 0xb67   :  { %v1134_v62 = vpop.xlane.xlu0 %1133  ;;  %v1125_v42 = vpop.xlane.xlu1 %1124 }
 0xb68   :  { %2231 = vrcp.f32 %v1134_v62 }
 0xb69   :  { %2233 = vrcp.f32 %v1125_v42 }
 0xb6a   :  { %2235 = vrcp.f32 %v1131_v47  ;;  %v2277_v47 = vld [vmem:[%s2977_s2 + $0x10] sm:$0xff] }
 0xb6b   :  { %v1128_v59 = vpop.xlane.xlu0 %1127  ;;  %v1143_v52 = vpop.xlane.xlu1 %1142 }
 0xb6c   :  { %2237 = vrcp.f32 %v1128_v59 }
 0xb6f   :  { %v1146_v2 = vpop.xlane.xlu0 %1145  ;;  %v1137_v36 = vpop.xlane.xlu1 %1136 }
 0xb70   :  { %2239 = vrcp.f32 %v1146_v2  ;;  %v2278_v2 = vld [vmem:[%s2977_s2 + $0x28] sm:$0xff] }
 0xb71   :  { %2241 = vrcp.f32 %v1137_v36 }
 0xb72   :  { %2243 = vrcp.f32 %v1143_v52 }
 0xb73   :  { %v1140_v37 = vpop.xlane.xlu0 %1139  ;;  %v1170_v46 = vpop.permute.xlu1 %1169 }
 0xb74   :  { %2245 = vrcp.f32 %v1140_v37  ;;  %2065 = vmatprep.subr.bf16.mxu0 %v1170_v46 }
 0xb75   :  { %v2232_v7 = vpop.eup %2231  ;;  %2066 = vmatpush3.bf16.msra.mxu0 %v1170_v46 }
 0xb76   :  { %v2234_v17 = vpop.eup %2233  ;;  %v1158_v41 = vmul.f32 %v2232_v7, %v2220_v58  ;;  %v2271_v58 = vld [vmem:[%s2977_s2 + $0x20] sm:$0xff] }
 0xb77   :  { %v1168_v63 = vpop.permute.xlu0 %1167  ;;  %v2236_v38 = vpop.eup %2235  ;;  %v1155_v51 = vmul.f32 %v2234_v17, %v2218_v4 }
 0xb78   :  { %2067 = vmatprep.subr.bf16.mxu0 %v1168_v63  ;;  %v1157_v43 = vmul.f32 %v2236_v38, %v2216_v26 }
 0xb79   :  { %v2238_v31 = vpop.eup %2237  ;;  %2068 = vmatpush3.bf16.msra.mxu0 %v1168_v63 }
 0xb7a   :  { %v1156_v39 = vmul.f32 %v2238_v31, %v2222_v5  ;;  %v1164_v15 = vpack.c.bf16 %v1158_v41, %v1157_v43  ;;  %2077 = vmatprep.subr.bf16.mxu0 %v2148_v18  ;;  %v2272_v5 = vld [vmem:[%s2977_s2 + $0x18] sm:$0xff] }
 0xb7c   :  { %v1163_v53 = vpack.c.bf16 %v1156_v39, %v1155_v51 }
 0xb7d   :  { %v2240_v0 = vpop.eup %2239 }
 0xb7e   :  { %2069 = vmatprep.mubr.msk.bf16.mxu0 %vm89_vm0, %v1163_v53  ;;  %v2242_v22 = vpop.eup %2241  ;;  %v1162_v10 = vmul.f32 %v2240_v0, %v2228_v29 }
 0xb7f   :  { %2070 = vmatmul.mubr.msk.bf16.vlgmr.msra.gmra.mxu0 %vm89_vm0, %v1164_v15  ;;  %v2244_v44 = vpop.eup %2243  ;;  %v1159_v27 = vmul.f32 %v2242_v22, %v2226_v28  ;;  %v2274_v28 = vld [vmem:[%s2977_s2] sm:$0xff]  ;;  %v1338_v15 = vrot.slane %v2722_v6, %v510_v56 }
 0xb80   :  { %v1161_v50 = vmul.f32 %v2244_v44, %v2224_v23  ;;  %2078 = vmatpush3.bf16.msra.mxu0 %v2148_v18  ;;  %v2273_v23 = vld [vmem:[%s2977_s2 + $0x30] sm:$0xff] }
 0xb81   :  { %v2246_v45 = vpop.eup %2245  ;;  %2079 = vmatprep.subr.bf16.mxu0 %v2149_v19 }
 0xb82   :  { %v1160_v14 = vmul.f32 %v2246_v45, %v2230_v20  ;;  %v1166_v16 = vpack.c.bf16 %v1162_v10, %v1161_v50 }
 0xb84   :  { %v1165_v54 = vpack.c.bf16 %v1160_v14, %v1159_v27  ;;  %2080 = vmatpush3.bf16.msra.mxu0 %v2149_v19 }
 0xb86   :  { %2073 = vmatprep.mubr.msk.bf16.mxu0 %vm89_vm0, %v1165_v54 }
 0xb87   :  { %2074 = vmatmul.mubr.msk.bf16.gmra.mxu0 %vm89_vm0, %v1166_v16 }
 0xc3f   :  { %v2071_v32 = vpop.f32.mrf.mxu0 }
 0xc40   :  { %v1252_v62 = vmul.f32 %v2277_v47, %v2071_v32 }
 0xc41   :  { %v1219_v25 = vpop.f32.mrf.mxu0 }
 0xc42   :  { %v1250_v29 = vmul.f32 %v2274_v28, %v1219_v25  ;;  %v1264_v31 = vsel %vm89_vm0, %v1252_v62, 0.0 }
 0xc43   :  { %v2072_v33 = vpop.f32.mrf.mxu0 }
 0xc44   :  { %v1253_v24 = vmul.f32 %v2272_v5, %v2072_v33  ;;  %v1258_v7 = vsel %vm89_vm0, %v1250_v29, 0.0  ;;  %v2151_v5 = vld [vmem:[%s2979_s4 + $0x38] ss:$12 sps:$4 sm:$0xff]  }
 0xc45   :  { %v1222_v26 = vpop.f32.mrf.mxu0 }
 0xc46   :  { %v1251_v20 = vmul.f32 %v2275_v8, %v1222_v26  ;;  %v1267_v37 = vsel %vm89_vm0, %v1253_v24, 0.0 }
 0xc47   :  { %v2075_v57 = vpop.f32.mrf.mxu0 }
 0xc48   :  { %v1256_v61 = vmul.f32 %v2273_v23, %v2075_v57  ;;  %v1261_v17 = vsel %vm89_vm0, %v1251_v20, 0.0 }
 0xc49   :  { %v1235_v4 = vpop.f32.mrf.mxu0 }
 0xc4a   :  { %v1254_v12 = vmul.f32 %v2271_v58, %v1235_v4  ;;  %v1265_v46 = vsel %vm89_vm0, %v1256_v61, 0.0 }
 0xc4b   :  { %v2076_v21 = vpop.f32.mrf.mxu0  ;;  %v1266_v39 = vadd.f32 %v1265_v46, %v1264_v31 }
 0xc4c   :  { %v1257_v48 = vmul.f32 %v2276_v49, %v2076_v21  ;;  %v1259_v59 = vsel %vm89_vm0, %v1254_v12, 0.0  ;;  %v2150_v12 = vld [vmem:[%s2979_s4 + $0x50] ss:$12 sps:$4 sm:$0xff]  }
 0xc4d   :  { %v1238_v42 = vpop.f32.mrf.mxu0  ;;  %v1260_v41 = vadd.f32 %v1259_v59, %v1258_v7  ;;  %2085 = vmatprep.subr.bf16.mxu1 %v2150_v12 }
 0xc4e   :  { %v1268_v52 = vsel %vm89_vm0, %v1257_v48, 0.0  ;;  %v1255_v36 = vmul.f32 %v2278_v2, %v1238_v42  ;;  %2086 = vmatpush3.bf16.msra.mxu1 %v2150_v12 }
 0xc4f   :  { %v1269_v63 = vadd.f32 %v1268_v52, %v1267_v37  ;;  %2087 = vmatprep.subr.bf16.mxu1 %v2151_v5 }
 0xc50   :  { %v1262_v38 = vsel %vm89_vm0, %v1255_v36, 0.0 }
 0xc51   :  { %v1263_v51 = vadd.f32 %v1262_v38, %v1261_v17  ;;  %v1271_v53 = vpack.c.bf16 %v1269_v63, %v1266_v39 }
 0xc52   :  { %2088 = vmatpush3.bf16.msra.mxu1 %v2151_v5  ;;  %v2153_v5 = vld [vmem:[%s2980_s5 + $0x30] sm:$0xff]  }
 0xc53   :  { %v1270_v43 = vpack.c.bf16 %v1263_v51, %v1260_v41 }
 0xc55   :  { %2081 = vmatprep.mubr.msk.bf16.mxu0 %vm89_vm0, %v1270_v43 }
 0xc56   :  { %2082 = vmatmul.mubr.msk.bf16.vlgmr.msra.gmra.mxu0 %vm89_vm0, %v1271_v53 }
 0xd16   :  { %v2083_v0 = vpop.f32.mrf.mxu0 }
 0xd17   :  { %v1341_v22 = vadd.f32 %v2083_v0, %v1338_v15 }
 0xd18   :  { %v1320_v44 = vpop.f32.mrf.mxu0 }
 0xd19   :  { %v2827_v45 = vadd.f32 %v1341_v22, %v2712_v1  ;;  %v1339_v10 = vadd.f32 %v1338_v15, %v1320_v44 }
 0xd1a   :  { %v2084_v27 = vpop.f32.mrf.mxu0 }
 0xd1b   :  { %v2830_v14 = vadd.f32 %v1339_v10, %v2705_v34  ;;  %v1342_v50 = vadd.f32 %v2084_v27, %v1338_v15  ;;  %v1353_v54 = vsel %vm89_vm0, %v2827_v45, 0.0 }
 0xd1c   :  { %1354 = vadd.xlane.f32.xlu1 %v1353_v54  ;;  %v1323_v16 = vpop.f32.mrf.mxu0 }
 0xd1d   :  { %v2835_v18 = vadd.f32 %v1342_v50, %v2714_v11  ;;  %v1340_v56 = vadd.f32 %v1338_v15, %v1323_v16  ;;  %v1347_v1 = vsel %vm89_vm0, %v2830_v14, 0.0  ;;  %v1359_v32 = vmul.f32 %v2830_v14, %v2830_v14 }
 0xd1e   :  { %v1414_v50 = vrot.slane %v2722_v6, %v586_v3 }
 0xd1f   :  { %v2838_v19 = vadd.f32 %v1340_v56, %v2707_v35  ;;  %v1356_v34 = vsel %vm89_vm0, %v2835_v18, 0.0  ;;  %v1363_v25 = vsel %vm89_vm0, %v1359_v32, 0.0  ;;  %v1361_v35 = vmul.f32 %v2827_v45, %v2827_v45 }
 0xd20   :  { %1348 = vadd.xlane.f32.xlu1 %v1347_v1  ;;  %1357 = vadd.xlane.f32.xlu0 %v1356_v34  ;;  %v1362_v4 = vmul.f32 %v2835_v18, %v2835_v18 }
 0xd21   :  { %v1350_v11 = vsel %vm89_vm0, %v2838_v19, 0.0  ;;  %v1360_v33 = vmul.f32 %v2838_v19, %v2838_v19  ;;  %v1369_v26 = vsel %vm89_vm0, %v1361_v35, 0.0 }
 0xd22   :  { %v1372_v58 = vsel %vm89_vm0, %v1362_v4, 0.0 }
 0xd23   :  { %v1366_v57 = vsel %vm89_vm0, %v1360_v33, 0.0 }
 0xd24   :  { %1364 = vadd.xlane.f32.xlu1 %v1363_v25  ;;  %1351 = vadd.xlane.f32.xlu0 %v1350_v11  ;;  %v1422_v11 = vrot.slane %v2722_v6, %v594_v30 }
 0xd28   :  { %1370 = vadd.xlane.f32.xlu1 %v1369_v26  ;;  %1367 = vadd.xlane.f32.xlu0 %v1366_v57 }
 0xd2c   :  { %1373 = vadd.xlane.f32.xlu0 %v1372_v58 }
 0xda5   :  { %v1355_v24 = vpop.xlane.xlu1 %1354 }
 0xda6   :  { %v1377_v28 = vmul.f32 0.03125, %v1355_v24  ;;  %v2154_v24 = vld [vmem:[%s2980_s5 + $0x28] sm:$0xff]  }
 0xda8   :  { %v1385_v62 = vmul.f32 %v1377_v28, %v1377_v28  ;;  %v1397_v54 = vsub.f32 %v2827_v45, %v1377_v28 }
 0xda9   :  { %v1349_v23 = vpop.xlane.xlu1 %1348  ;;  %v1358_v61 = vpop.xlane.xlu0 %1357 }
 0xdaa   :  { %v1375_v21 = vmul.f32 0.03125, %v1349_v23  ;;  %v1378_v42 = vmul.f32 0.03125, %v1358_v61  ;;  %v2155_v23 = vld [vmem:[%s2980_s5 + $0x20] sm:$0xff]   ;;  %v1432_v61 = vrot.slane %v2722_v6, %v604_v60 }
 0xdac   :  { %v1383_v20 = vmul.f32 %v1375_v21, %v1375_v21  ;;  %v1386_v38 = vmul.f32 %v1378_v42, %v1378_v42  ;;  %v1395_v10 = vsub.f32 %v2830_v14, %v1375_v21  ;;  %v1398_v14 = vsub.f32 %v2835_v18, %v1378_v42  ;;  %v2152_v18 = vld [vmem:[%s2980_s5 + $0x38] sm:$0xff]  }
 0xdad   :  { %v1365_v29 = vpop.xlane.xlu1 %1364  ;;  %v1352_v8 = vpop.xlane.xlu0 %1351  ;;  %2093 = vmatprep.subr.bf16.mxu0 %v2152_v18 }
 0xdae   :  { %v1379_v49 = vmul.f32 0.03125, %v1365_v29  ;;  %v1376_v48 = vmul.f32 0.03125, %v1352_v8  ;;  %2094 = vmatpush3.bf16.msra.mxu0 %v2152_v18 }
 0xdaf   :  { %2095 = vmatprep.subr.bf16.mxu0 %v2153_v5 }
 0xdb0   :  { %v1387_v47 = vsub.f32 %v1379_v49, %v1383_v20  ;;  %v1384_v36 = vmul.f32 %v1376_v48, %v1376_v48  ;;  %v1396_v56 = vsub.f32 %v2838_v19, %v1376_v48 }
 0xdb1   :  { %v1371_v59 = vpop.xlane.xlu1 %1370  ;;  %v1368_v52 = vpop.xlane.xlu0 %1367 }
 0xdb2   :  { %v1391_v2 = vmax.f32 %v1387_v47, 0.0  ;;  %v1381_v37 = vmul.f32 0.03125, %v1371_v59  ;;  %v1380_v46 = vmul.f32 0.03125, %v1368_v52  ;;  %2096 = vmatpush3.bf16.msra.mxu0 %v2153_v5 }
 0xdb3   :  { %2097 = vmatprep.subr.bf16.mxu0 %v2154_v24 }
 0xdb4   :  { %v1399_v7 = vadd.f32 1e-12, %v1391_v2  ;;  %v1389_v17 = vsub.f32 %v1381_v37, %v1385_v62  ;;  %v1388_v63 = vsub.f32 %v1380_v46, %v1384_v36 }
 0xdb5   :  { %v1374_v31 = vpop.xlane.xlu0 %1373 }
 0xdb6   :  { %2247 = vrsqrt.f32 %v1399_v7  ;;  %v1393_v41 = vmax.f32 %v1389_v17, 0.0  ;;  %v1392_v51 = vmax.f32 %v1388_v63, 0.0  ;;  %v1382_v39 = vmul.f32 0.03125, %v1374_v31  ;;  %2098 = vmatpush3.bf16.msra.mxu0 %v2154_v24 }
 0xdb7   :  { %2099 = vmatprep.subr.bf16.mxu0 %v2155_v23 }
 0xdb8   :  { %v1401_v43 = vadd.f32 1e-12, %v1393_v41  ;;  %v1400_v53 = vadd.f32 1e-12, %v1392_v51  ;;  %v1390_v15 = vsub.f32 %v1382_v39, %v1386_v38 }
 0xdba   :  { %2249 = vrsqrt.f32 %v1401_v43  ;;  %v1394_v0 = vmax.f32 %v1390_v15, 0.0  ;;  %2100 = vmatpush3.bf16.msra.mxu0 %v2155_v23 }
 0xdbb   :  { %2251 = vrsqrt.f32 %v1400_v53 }
 0xdbc   :  { %v1402_v22 = vadd.f32 1e-12, %v1394_v0 }
 0xdbe   :  { %2253 = vrsqrt.f32 %v1402_v22 }
 0xdc3   :  { %v2248_v44 = vpop.eup %2247 }
 0xdc4   :  { %v1407_v27 = vmul.f32 %v2248_v44, %v1395_v10 }
 0xdc6   :  { %v1415_v25 = vmul.f32 %v1414_v50, %v1407_v27 }
 0xdc7   :  { %v2250_v16 = vpop.eup %2249 }
 0xdc8   :  { %v2252_v1 = vpop.eup %2251  ;;  %v1409_v34 = vmul.f32 %v2250_v16, %v1397_v54  ;;  %v2874_v3 = vadd.f32 %v1422_v11, %v1415_v25 }
 0xdc9   :  { %v1408_v32 = vmul.f32 %v2252_v1, %v1396_v56 }
 0xdca   :  { %v1417_v57 = vmul.f32 %v1414_v50, %v1409_v34 }
 0xdcb   :  { %v2254_v35 = vpop.eup %2253  ;;  %v1416_v33 = vmul.f32 %v1414_v50, %v1408_v32 }
 0xdcc   :  { %v1410_v26 = vmul.f32 %v2254_v35, %v1398_v14  ;;  %v2880_v58 = vadd.f32 %v1422_v11, %v1417_v57  ;;  %v1541_v57 = vrot.slane %v2722_v6, %v713_v13 }
 0xdcd   :  { %v2876_v45 = vadd.f32 %v1422_v11, %v1416_v33 }
 0xdce   :  { %v1418_v4 = vmul.f32 %v1414_v50, %v1410_v26 }
 0xdcf   :  { %v1427_v19 = vpack.c.bf16 %v2876_v45, %v2874_v3 }
 0xdd0   :  { %v2882_v12 = vadd.f32 %v1422_v11, %v1418_v4 }
 0xdd1   :  { %2089 = vmatprep.mubr.msk.bf16.mxu1 %vm89_vm0, %v1427_v19 }
 0xdd2   :  { %v1428_v30 = vpack.c.bf16 %v2882_v12, %v2880_v58 }
 0xdd4   :  { %2090 = vmatmul.mubr.msk.bf16.vlgmr.msra.gmra.mxu1 %vm89_vm0, %v1428_v30 }
 0xe94   :  { %v2091_v21 = vpop.f32.mrf.mxu1 }
 0xe95   :  { %v1494_v28 = vadd.f32 %v2091_v21, %v1432_v61 }
 0xe96   :  { %v1485_v29 = vpop.f32.mrf.mxu1 }
 0xe97   :  { %v1502_v8 = vmul.f32 %v1494_v28, %v1494_v28  ;;  %v1486_v20 = vadd.f32 %v1485_v29, %v1432_v61 }
 0xe98   :  { %v2092_v49 = vpop.f32.mrf.mxu1 }
 0xe99   :  { %v1506_v48 = vmul.f32 %v1502_v8, %v1494_v28  ;;  %v1500_v47 = vmul.f32 %v1486_v20, %v1486_v20  ;;  %v1497_v62 = vadd.f32 %v2092_v49, %v1432_v61 }
 0xe9a   :  { %v1488_v42 = vpop.f32.mrf.mxu1 }
 0xe9b   :  { %v1510_v59 = vmul.f32 0.044715, %v1506_v48  ;;  %v1504_v52 = vmul.f32 %v1500_v47, %v1486_v20  ;;  %v1503_v2 = vmul.f32 %v1497_v62, %v1497_v62  ;;  %v1489_v36 = vadd.f32 %v1488_v42, %v1432_v61 }
 0xe9d   :  { %v1514_v37 = vadd.f32 %v1510_v59, %v1494_v28  ;;  %v1508_v46 = vmul.f32 0.044715, %v1504_v52  ;;  %v1507_v7 = vmul.f32 %v1503_v2, %v1497_v62  ;;  %v1501_v17 = vmul.f32 %v1489_v36, %v1489_v36 }
 0xe9e   :  { %v2303_v52 = vmov 0.0  }
 0xe9f   :  { %v1518_v63 = vmul.f32 0.7978846, %v1514_v37  ;;  %v1512_v60 = vadd.f32 %v1508_v46, %v1486_v20  ;;  %v1511_v38 = vmul.f32 0.044715, %v1507_v7  ;;  %v1505_v31 = vmul.f32 %v1501_v17, %v1489_v36  ;;  %2105 = vmatprep.subr.bf16.mxu1 %v2303_v52  ;;  %2109 = vmatprep.mubr.msk.bf16.mxu1 %vm2304_vm2, %v2303_v52 }
 0xea1   :  { %v1516_v41 = vmul.f32 0.7978846, %v1512_v60  ;;  %v1515_v51 = vadd.f32 %v1511_v38, %v1497_v62  ;;  %v1509_v39 = vmul.f32 0.044715, %v1505_v31  ;;  %2255 = vtanh.f32 %v1518_v63 }
 0xea3   :  { %2257 = vtanh.f32 %v1516_v41  ;;  %v1519_v43 = vmul.f32 0.7978846, %v1515_v51  ;;  %v1513_v53 = vadd.f32 %v1509_v39, %v1489_v36 }
 0xea5   :  { %2259 = vtanh.f32 %v1519_v43  ;;  %v1517_v15 = vmul.f32 0.7978846, %v1513_v53 }
 0xea7   :  { %2261 = vtanh.f32 %v1517_v15 }
 0xeae   :  { %v2256_v0 = vpop.eup %2255 }
 0xeaf   :  { %v1526_v27 = vadd.f32 1.0, %v2256_v0 }
 0xeb0   :  { %v2258_v22 = vpop.eup %2257 }
 0xeb1   :  { %v1524_v44 = vadd.f32 1.0, %v2258_v22  ;;  %v1530_v34 = vmul.f32 0.5, %v1526_v27 }
 0xeb2   :  { %v2260_v10 = vpop.eup %2259 }
 0xeb3   :  { %v1527_v50 = vadd.f32 1.0, %v2260_v10  ;;  %v1528_v16 = vmul.f32 0.5, %v1524_v44  ;;  %v1534_v35 = vmul.f32 %v1530_v34, %v1494_v28 }
 0xeb4   :  { %v2262_v54 = vpop.eup %2261 }
 0xeb5   :  { %v1531_v56 = vmul.f32 0.5, %v1527_v50  ;;  %v1525_v1 = vadd.f32 1.0, %v2262_v54  ;;  %v1532_v11 = vmul.f32 %v1528_v16, %v1486_v20 }
 0xeb7   :  { %v1529_v32 = vmul.f32 0.5, %v1525_v1  ;;  %v1535_v25 = vmul.f32 %v1531_v56, %v1497_v62 }
 0xeb9   :  { %v1533_v14 = vmul.f32 %v1529_v32, %v1489_v36  ;;  %v1537_v26 = vpack.c.bf16 %v1535_v25, %v1534_v35 }
 0xebb   :  { %v1536_v33 = vpack.c.bf16 %v1533_v14, %v1532_v11 }
 0xebd   :  { %2101 = vmatprep.mubr.msk.bf16.mxu0 %vm739_vm1, %v1536_v33 }
 0xebe   :  { %2102 = vmatmul.mubr.msk.bf16.vlgmr.msra.gmra.mxu0 %vm739_vm1, %v1537_v26 }
 0xf7e   :  { %v2103_v4 = vpop.f32.mrf.mxu0 }
 0xf7f   :  { %v1615_v19 = vadd.f32 %v2103_v4, %v1541_v57  ;;  %v1692_v4 = vrot.slane %v2722_v6, %v865_v40 }
 0xf80   :  { %v1606_v30 = vpop.f32.mrf.mxu0 }
 0xf81   :  { %v2909_v18 = vadd.f32 %v1615_v19, %v2880_v58  ;;  %v1607_v5 = vadd.f32 %v1606_v30, %v1541_v57 }
 0xf82   :  { %v2104_v24 = vpop.f32.mrf.mxu0 }
 0xf83   :  { %v1618_v23 = vadd.f32 %v2104_v24, %v1541_v57  ;;  %v1631_v61 = vsel %vm89_vm0, %v2909_v18, 0.0  ;;  %v1639_v21 = vmul.f32 %v2909_v18, %v2909_v18  ;;  %v2919_v13 = vadd.f32 %v1607_v5, %v2874_v3 }
 0xf84   :  { %1632 = vadd.xlane.f32.xlu1 %v1631_v61  ;;  %v1609_v28 = vpop.f32.mrf.mxu0 }
 0xf85   :  { %v2916_v29 = vadd.f32 %v1618_v23, %v2882_v12  ;;  %v1610_v8 = vadd.f32 %v1609_v28, %v1541_v57  ;;  %v1647_v58 = vsel %vm89_vm0, %v1639_v21, 0.0  ;;  %v1625_v3 = vsel %vm89_vm0, %v2919_v13, 0.0 }
 0xf86   :  { %v1637_v47 = vmul.f32 %v2919_v13, %v2919_v13  ;;  %v1700_v23 = vrot.slane %v2722_v6, %v873_v55  ;;  %v2156_v6 = vld [vmem:[%s2978_s3] sm:$0xff]  }
 0xf87   :  { %v1634_v20 = vsel %vm89_vm0, %v2916_v29, 0.0  ;;  %v1640_v49 = vmul.f32 %v2916_v29, %v2916_v29  ;;  %v2927_v48 = vadd.f32 %v1610_v8, %v2876_v45 }
 0xf88   :  { %1648 = vadd.xlane.f32.xlu1 %v1647_v58  ;;  %1635 = vadd.xlane.f32.xlu0 %v1634_v20  ;;  %v1641_v42 = vsel %vm89_vm0, %v1637_v47, 0.0 }
 0xf89   :  { %v1650_v12 = vsel %vm89_vm0, %v1640_v49, 0.0  ;;  %v1628_v62 = vsel %vm89_vm0, %v2927_v48, 0.0  ;;  %v1638_v59 = vmul.f32 %v2927_v48, %v2927_v48 }
 0xf8b   :  { %v1644_v45 = vsel %vm89_vm0, %v1638_v59, 0.0 }
 0xf8c   :  { %1651 = vadd.xlane.f32.xlu0 %v1650_v12  ;;  %1626 = vadd.xlane.f32.xlu1 %v1625_v3 }
 0xf90   :  { %1629 = vadd.xlane.f32.xlu0 %v1628_v62  ;;  %1642 = vadd.xlane.f32.xlu1 %v1641_v42 }
 0xf94   :  { %1645 = vadd.xlane.f32.xlu0 %v1644_v45 }
0x100d   :  { %v1633_v2 = vpop.xlane.xlu1 %1632 }
0x100e   :  { %v1655_v36 = vmul.f32 0.03125, %v1633_v2 }
0x1010   :  { %v1663_v7 = vmul.f32 %v1655_v36, %v1655_v36  ;;  %v1675_v33 = vsub.f32 %v2909_v18, %v1655_v36  ;;  %v1915_v36 = vld [vmem:[%s2983_s8] ss:$0 sm:$0xff] }
0x1011   :  { %v1649_v37 = vpop.xlane.xlu1 %1648  ;;  %v1636_v46 = vpop.xlane.xlu0 %1635 }
0x1012   :  { %v1659_v17 = vmul.f32 0.03125, %v1649_v37  ;;  %v1656_v63 = vmul.f32 0.03125, %v1636_v46 }
0x1014   :  { %v1667_v60 = vsub.f32 %v1659_v17, %v1663_v7  ;;  %v1664_v51 = vmul.f32 %v1656_v63, %v1656_v63  ;;  %v1676_v19 = vsub.f32 %v2916_v29, %v1656_v63 }
0x1015   :  { %v1652_v38 = vpop.xlane.xlu0 %1651  ;;  %v1627_v31 = vpop.xlane.xlu1 %1626 }
0x1016   :  { %v1671_v41 = vmax.f32 %v1667_v60, 0.0  ;;  %v1660_v39 = vmul.f32 0.03125, %v1652_v38  ;;  %v1653_v43 = vmul.f32 0.03125, %v1627_v31 }
0x1018   :  { %v1679_v53 = vadd.f32 1e-12, %v1671_v41  ;;  %v1668_v15 = vsub.f32 %v1660_v39, %v1664_v51  ;;  %v1661_v0 = vmul.f32 %v1653_v43, %v1653_v43  ;;  %v1673_v61 = vsub.f32 %v2919_v13, %v1653_v43  ;;  %v2157_v13 = vld [vmem:[%s2982_s7 + $0x8] sm:$0xff]  }
0x1019   :  { %v1630_v22 = vpop.xlane.xlu0 %1629  ;;  %v1643_v44 = vpop.xlane.xlu1 %1642 }
0x101a   :  { %2263 = vrsqrt.f32 %v1679_v53  ;;  %v1672_v10 = vmax.f32 %v1668_v15, 0.0  ;;  %v1654_v27 = vmul.f32 0.03125, %v1630_v22  ;;  %v1657_v50 = vmul.f32 0.03125, %v1643_v44 }
0x101c   :  { %v1680_v54 = vadd.f32 1e-12, %v1672_v10  ;;  %v1665_v16 = vsub.f32 %v1657_v50, %v1661_v0  ;;  %v1662_v1 = vmul.f32 %v1654_v27, %v1654_v27  ;;  %v1674_v20 = vsub.f32 %v2927_v48, %v1654_v27  ;;  %v2158_v48 = vld [vmem:[%s2982_s7] sm:$0xff]   ;;  %s2279_s7 = scalar_lea.vmem %s1834_s23, 256 }
0x101d   :  { %v1646_v56 = vpop.xlane.xlu0 %1645  ;;  %p2280_p0 = scmp.ne.s32.totalorder %s1834_s23, %s2279_s7  ;;  %p2285_p2 = scmp.lt.s32.totalorder %s2279_s7, %s2279_s7 }
0x101e   :  { %2265 = vrsqrt.f32 %v1680_v54  ;;  %v1669_v34 = vmax.f32 %v1665_v16, 0.0  ;;  %v1658_v32 = vmul.f32 0.03125, %v1646_v56 }
0x101f   :  { %p2286_p3 = por %p2285_p2, %p2284_p1 }
0x1020   :  { %v1677_v25 = vadd.f32 1e-12, %v1669_v34  ;;  %v1666_v11 = vsub.f32 %v1658_v32, %v1662_v1 }
0x1021   :  { %p2287_p4 = pnand %p2286_p3, %p2280_p0 }
0x1022   :  { %2267 = vrsqrt.f32 %v1677_v25  ;;  %v1670_v14 = vmax.f32 %v1666_v11, 0.0 }
0x1024   :  { %v1678_v35 = vadd.f32 1e-12, %v1670_v14 }
0x1026   :  { %2269 = vrsqrt.f32 %v1678_v35 }
0x1027   :  { %v2264_v26 = vpop.eup %2263 }
0x1028   :  { %v1687_v57 = vmul.f32 %v2264_v26, %v1675_v33 }
0x102a   :  { %v1695_v24 = vmul.f32 %v1692_v4, %v1687_v57 }
0x102b   :  { %v2266_v30 = vpop.eup %2265 }
0x102c   :  { %v1688_v5 = vmul.f32 %v2266_v30, %v1676_v19  ;;  %v1703_v28 = vadd.f32 %v1700_v23, %v1695_v24 }
0x102e   :  { %v1696_v21 = vmul.f32 %v1692_v4, %v1688_v5 }
0x102f   :  { %v2268_v18 = vpop.eup %2267 }
0x1030   :  { %v1704_v8 = vadd.f32 %v1700_v23, %v1696_v21  ;;  %v1685_v58 = vmul.f32 %v2268_v18, %v1673_v61 }
0x1032   :  { %v1708_v49 = vpack.c.bf16 %v1704_v8, %v1703_v28  ;;  %v1693_v12 = vmul.f32 %v1692_v4, %v1685_v58 }
0x1033   :  { %v2270_v40 = vpop.eup %2269 }
0x1034   :  { %2106 = vmatpush3.bf16.msra.mxu1 %v1708_v49  ;;  %v1686_v29 = vmul.f32 %v2270_v40, %v1674_v20  ;;  %v1701_v9 = vadd.f32 %v1700_v23, %v1693_v12 }
0x1035   :  { %2107 = vmatprep.subr.bf16.mxu1 %v2303_v52 }
0x1036   :  { %v1694_v3 = vmul.f32 %v1692_v4, %v1686_v29 }
0x1038   :  { %v1702_v47 = vadd.f32 %v1700_v23, %v1694_v3 }
0x103a   :  { %v1707_v55 = vpack.c.bf16 %v1702_v47, %v1701_v9 }
0x103c   :  { %2108 = vmatpush3.bf16.msra.mxu1 %v1707_v55 }
0x103d   :  { %2113 = vmatprep.subr.bf16.mxu1 %v2303_v52 }
0x103f   :  { %2110 = vmatmul.mubr.msk.bf16.vlgmr.msra.gmra.mxu1 %vm89_vm0, %v2156_v6 }
0x1040   :  { %2117 = vmatprep.mubr.msk.bf16.mxu1 %vm2304_vm2, %v2303_v52  ;;  %2114 = vmatpush3.bf16.msra.mxu1 %v2157_v13 }
0x1041   :  { %2115 = vmatprep.subr.bf16.mxu1 %v2303_v52 }
0x1044   :  { %2116 = vmatpush3.bf16.msra.mxu1 %v2158_v48 }
0x10ff   :  { %v1751_v62 = vpop.f32.mrf.mxu1 }
0x1101   :  { %v2111_v42 = vpop.f32.mrf.mxu1 }
0x1103   :  { %v1754_v59 = vpop.f32.mrf.mxu1 }
0x1104   :  { %v1758_v45 = vpack.c.bf16 %v1754_v59, %v1751_v62 }
0x1105   :  { %v2112_v2 = vpop.f32.mrf.mxu1 }
0x1106   :  { %2118 = vmatmul.mubr.msk.bf16.vlgmr.msra.gmra.mxu1 %vm89_vm0, %v1758_v45 }
0x11c6   :  { %v1819_v37 = vpop.f32.mrf.mxu1 }
0x11c7   :  { %v1820_v46 = vadd.f32 %v1915_v36, %v1819_v37 }
0x11c8   :  { %v2119_v7 = vpop.f32.mrf.mxu1 }
0x11c9   :  { %1826 = vst [vmem:[#allocation2] sm:$0xff] %v1820_v46 }
0x11ca   :  { %v1822_v52 = vpop.f32.mrf.mxu1 }
0x11cb   :  { %v1823_v17 = vadd.f32 %v1915_v36, %v1822_v52 }
0x11cc   :  { %v2120_v63 = vpop.f32.mrf.mxu1 }
0x11cd   :  { %1827 = vst [vmem:[#allocation2 + $0x8] sm:$0xff] %v1823_v17 }
0x11ce   :  { %2290 = shalt.err (!%p2287_p4)
}
0x11cf   :  { %s2306_s24 = smov 128   ;;  %s2307_s8 = smov 8  }
0x11d0   :  { %1839 = dma.vmem_to_hbm [thread:$0]  %s1834_s23, 256, %s2984_s9, [#allocation3], %s2306_s24, %s2306_s24, %s2307_s8  }
0x11d1   :  { %2299 = dma.done.wait [#allocation3], 256  }
0x11d2   :  { %2300 = vsyncadd [#allocation3], 4294967040 }
0x11d3   :  { %1843 = vsyncpa [#allocation3], 1 }

</bundles_post_ra>
